<compile_context>
chip_gen: v6e
topology: v6e:2x2x1
jax: 0.10.0
libtpu: 0.0.40
codegen_flags: <defaults>
</compile_context>

<pallas_src>
import functools

import jax
import jax.numpy as jnp
from jax import lax
from jax.experimental import pallas as pl
from jax.experimental.pallas import tpu as pltpu


# ----------------------------------------------------------------------------
# Fused Pallas kernel: stacked LSTM layers + fc head, everything in VMEM.
# ----------------------------------------------------------------------------
def _lstm01_fused_kernel(x_ref, *refs, num_layers, hidden_size):
    """refs layout: [wih_t, whh_t, b] * num_layers, w1_t, b1, w2_t, b2, out_ref.

    x_ref    : (T, In)
    wih_t    : (In_l, 4H)   input->gates weight for layer l (pre-transposed)
    whh_t    : (H, 4H)      hidden->gates weight for layer l (pre-transposed)
    b        : (1, 4H)      b_ih + b_hh for layer l
    w1_t,b1  : (H, H//4), (1, H//4)
    w2_t,b2  : (H//4, out), (1, out)
    out_ref  : (T, out)
    """
    H = hidden_size
    layer_refs = refs[: 3 * num_layers]
    w1_ref, b1_ref, w2_ref, b2_ref, out_ref = refs[3 * num_layers:]

    T = x_ref.shape[0]
    h_seq = x_ref[...]                                    # (T, In) value, stays on-chip

    for l in range(num_layers):
        wih_ref = layer_refs[3 * l + 0]
        whh_ref = layer_refs[3 * l + 1]
        b_ref = layer_refs[3 * l + 2]
        whh = whh_ref[...]                                # load once per layer

        # Hoisted input projection: one batched MXU matmul for the whole
        # sequence (+ bias), instead of a (1, In) matmul per timestep.
        xg = (
            jnp.dot(h_seq, wih_ref[...], preferred_element_type=jnp.float32)
            + b_ref[...]
        )                                                 # (T, 4H)

        h = jnp.zeros((1, H), jnp.float32)
        c = jnp.zeros((1, H), jnp.float32)
        rows = []
        # Fully unrolled recurrence (T is a static Python int).
        for t in range(T):
            gates = xg[t : t + 1, :] + jnp.dot(
                h, whh, preferred_element_type=jnp.float32
            )                                             # (1, 4H)
            # Two full-row transcendental passes instead of four quarter-row ones.
            sig = jax.nn.sigmoid(gates)
            th = jnp.tanh(gates)
            i_g = sig[:, 0 * H:1 * H]
            f_g = sig[:, 1 * H:2 * H]
            g_g = th[:, 2 * H:3 * H]
            o_g = sig[:, 3 * H:4 * H]
            c = f_g * c + i_g * g_g
            h = o_g * jnp.tanh(c)
            rows.append(h)
        h_seq = jnp.concatenate(rows, axis=0)             # (T, H), single dense slab

    # fc head: Linear(H -> H//4) -> Dropout(0.5) [eval: identity] -> Linear(H//4 -> out)
    # TODO(synk): training-mode dropout (random mask + 2x scale) not implemented.
    hid = (
        jnp.dot(h_seq, w1_ref[...], preferred_element_type=jnp.float32)
        + b1_ref[...]
    )
    out_ref[...] = (
        jnp.dot(hid, w2_ref[...], preferred_element_type=jnp.float32)
        + b2_ref[...]
    )


# ----------------------------------------------------------------------------
# Wrapper
# ----------------------------------------------------------------------------
_VMEM = pl.BlockSpec(memory_space=pltpu.MemorySpace.VMEM)


def lstm_01_forward(x, params):
    """Full LSTM_01 forward as ONE fused pallas_call."""
    T = x.shape[0]
    num_layers = len(params["lstm"])
    hidden_size = params["lstm"][0]["w_hh_t"].shape[0]
    out_dim = params["fc"]["w2_t"].shape[1]

    args = [x]
    for lp in params["lstm"]:
        args += [lp["w_ih_t"], lp["w_hh_t"], lp["b"]]
    args += [params["fc"]["w1_t"], params["fc"]["b1"],
             params["fc"]["w2_t"], params["fc"]["b2"]]

    kernel = functools.partial(
        _lstm01_fused_kernel, num_layers=num_layers, hidden_size=hidden_size
    )
    return pl.pallas_call(
        kernel,
        out_shape=jax.ShapeDtypeStruct((T, out_dim), jnp.float32),
        in_specs=[_VMEM] * len(args),
        out_specs=_VMEM,
    )(*args)


# ----------------------------------------------------------------------------
# Pure-JAX reference (for correctness check)
# ----------------------------------------------------------------------------
def lstm_01_reference(x, params):
    h_seq = x
    for layer_p in params["lstm"]:
        H = layer_p["w_hh_t"].shape[0]
        wih_t, whh_t, b = layer_p["w_ih_t"], layer_p["w_hh_t"], layer_p["b"]

        def step(carry, x_t):
            h, c = carry
            gates = x_t[None, :] @ wih_t + h @ whh_t + b
            i_g = jax.nn.sigmoid(gates[:, 0 * H:1 * H])
            f_g = jax.nn.sigmoid(gates[:, 1 * H:2 * H])
            g_g = jnp.tanh(gates[:, 2 * H:3 * H])
            o_g = jax.nn.sigmoid(gates[:, 3 * H:4 * H])
            c_new = f_g * c + i_g * g_g
            h_new = o_g * jnp.tanh(c_new)
            return (h_new, c_new), h_new[0]

        init = (jnp.zeros((1, H), jnp.float32), jnp.zeros((1, H), jnp.float32))
        _, h_seq = lax.scan(step, init, h_seq)
    h = h_seq @ params["fc"]["w1_t"] + params["fc"]["b1"]
    return h @ params["fc"]["w2_t"] + params["fc"]["b2"]


# ----------------------------------------------------------------------------
# Deterministic parameter init (PyTorch-style uniform(-1/sqrt(H), 1/sqrt(H)))
# ----------------------------------------------------------------------------
def init_params(key, input_size, hidden_size, num_layers, output_size):
    k_lstm = 1.0 / jnp.sqrt(hidden_size)
    params = {"lstm": []}
    for layer in range(num_layers):
        in_sz = input_size if layer == 0 else hidden_size
        key, k1, k2, k3, k4 = jax.random.split(key, 5)
        w_ih = jax.random.uniform(k1, (4 * hidden_size, in_sz), jnp.float32, -k_lstm, k_lstm)
        w_hh = jax.random.uniform(k2, (4 * hidden_size, hidden_size), jnp.float32, -k_lstm, k_lstm)
        b_ih = jax.random.uniform(k3, (4 * hidden_size,), jnp.float32, -k_lstm, k_lstm)
        b_hh = jax.random.uniform(k4, (4 * hidden_size,), jnp.float32, -k_lstm, k_lstm)
        params["lstm"].append({
            "w_ih_t": w_ih.T,                       # (In, 4H)
            "w_hh_t": w_hh.T,                       # (H, 4H)
            "b": (b_ih + b_hh)[None, :],            # (1, 4H)
        })

    mid = hidden_size // 4
    k_fc1 = 1.0 / jnp.sqrt(hidden_size)
    k_fc2 = 1.0 / jnp.sqrt(mid)
    key, k1, k2, k3, k4 = jax.random.split(key, 5)
    w1 = jax.random.uniform(k1, (mid, hidden_size), jnp.float32, -k_fc1, k_fc1)
    b1 = jax.random.uniform(k2, (mid,), jnp.float32, -k_fc1, k_fc1)
    w2 = jax.random.uniform(k3, (output_size, mid), jnp.float32, -k_fc2, k_fc2)
    b2 = jax.random.uniform(k4, (output_size,), jnp.float32, -k_fc2, k_fc2)
    params["fc"] = {
        "w1_t": w1.T, "b1": b1[None, :],            # (H, H/4), (1, H/4)
        "w2_t": w2.T, "b2": b2[None, :],            # (H/4, out), (1, out)
    }
    return params


# ----------------------------------------------------------------------------
if __name__ == "__main__":
    input_size, hidden_size, num_layers, output_size = 16, 32, 2, 4
    seq_len = 8

    key = jax.random.PRNGKey(0)
    key_x, key_p = jax.random.split(key)
    x = jax.random.normal(key_x, (seq_len, input_size), jnp.float32)
    params = init_params(key_p, input_size, hidden_size, num_layers, output_size)

    out = jax.block_until_ready(lstm_01_forward(x, params))
    ref = jax.block_until_ready(lstm_01_reference(x, params))

    assert out.shape == (seq_len, output_size), out.shape
    assert jnp.allclose(out, ref, atol=1e-5, rtol=1e-5), (
        f"max abs err {jnp.max(jnp.abs(out - ref))}")

    print("KERNEL_OK")
</pallas_src>

<mosaic_0001>
module attributes {stable_mosaic.version = 11 : i64} {
  func.func @_lstm01_fused_kernel(%arg0: memref<8x16xf32, #tpu.memory_space<vmem>>, %arg1: memref<16x128xf32, #tpu.memory_space<vmem>>, %arg2: memref<32x128xf32, #tpu.memory_space<vmem>>, %arg3: memref<1x128xf32, #tpu.memory_space<vmem>>, %arg4: memref<32x128xf32, #tpu.memory_space<vmem>>, %arg5: memref<32x128xf32, #tpu.memory_space<vmem>>, %arg6: memref<1x128xf32, #tpu.memory_space<vmem>>, %arg7: memref<32x8xf32, #tpu.memory_space<vmem>>, %arg8: memref<1x8xf32, #tpu.memory_space<vmem>>, %arg9: memref<8x4xf32, #tpu.memory_space<vmem>>, %arg10: memref<1x4xf32, #tpu.memory_space<vmem>>, %arg11: memref<8x4xf32, #tpu.memory_space<vmem>>) attributes {dimension_semantics = [], scalar_prefetch = 0 : i64, scratch_operands = 0 : i64, tpu.core_type = #tpu.core_type<tc>} {
    %c0 = arith.constant 0 : index
    %c0_0 = arith.constant 0 : index
    %0 = vector.load %arg0[%c0, %c0_0] : memref<8x16xf32, #tpu.memory_space<vmem>>, vector<8x16xf32>
    %c0_1 = arith.constant 0 : index
    %c0_2 = arith.constant 0 : index
    %1 = vector.load %arg2[%c0_1, %c0_2] : memref<32x128xf32, #tpu.memory_space<vmem>>, vector<32x128xf32>
    %c0_3 = arith.constant 0 : index
    %c0_4 = arith.constant 0 : index
    %2 = vector.load %arg1[%c0_3, %c0_4] : memref<16x128xf32, #tpu.memory_space<vmem>>, vector<16x128xf32>
    %cst = arith.constant dense<0.000000e+00> : vector<8x128xf32>
    %3 = tpu.matmul %0, %2, %cst {dimension_numbers = #tpu.dot_dimension_numbers<[1], [0], [0], [1], [0, 0, 1, 1], [], []>} : vector<8x16xf32>, vector<16x128xf32>, vector<8x128xf32> -> vector<8x128xf32>
    %c0_5 = arith.constant 0 : index
    %c0_6 = arith.constant 0 : index
    %4 = vector.load %arg3[%c0_5, %c0_6] : memref<1x128xf32, #tpu.memory_space<vmem>>, vector<1x128xf32>
    %5 = vector.broadcast %4 : vector<1x128xf32> to vector<8x128xf32>
    %6 = arith.addf %3, %5 : vector<8x128xf32>
    %cst_7 = arith.constant 0.000000e+00 : f32
    %7 = vector.broadcast %cst_7 : f32 to vector<1x32xf32>
    %cst_8 = arith.constant 0.000000e+00 : f32
    %8 = vector.broadcast %cst_8 : f32 to vector<1x32xf32>
    %9 = vector.extract_strided_slice %6 {offsets = [0, 0], sizes = [1, 128], strides = [1, 1]} : vector<8x128xf32> to vector<1x128xf32>
    %cst_9 = arith.constant dense<0.000000e+00> : vector<1x128xf32>
    %10 = tpu.matmul %7, %1, %cst_9 {dimension_numbers = #tpu.dot_dimension_numbers<[1], [0], [0], [1], [0, 0, 1, 1], [], []>} : vector<1x32xf32>, vector<32x128xf32>, vector<1x128xf32> -> vector<1x128xf32>
    %11 = arith.addf %9, %10 : vector<1x128xf32>
    %12 = arith.negf %11 : vector<1x128xf32>
    %13 = math.exp %12 : vector<1x128xf32>
    %cst_10 = arith.constant 1.000000e+00 : f32
    %14 = vector.broadcast %cst_10 : f32 to vector<1x128xf32>
    %15 = arith.addf %14, %13 : vector<1x128xf32>
    %16 = arith.divf %14, %15 : vector<1x128xf32>
    %17 = math.tanh %11 : vector<1x128xf32>
    %18 = vector.extract_strided_slice %16 {offsets = [0, 0], sizes = [1, 32], strides = [1, 1]} : vector<1x128xf32> to vector<1x32xf32>
    %19 = vector.extract_strided_slice %16 {offsets = [0, 32], sizes = [1, 32], strides = [1, 1]} : vector<1x128xf32> to vector<1x32xf32>
    %20 = vector.extract_strided_slice %17 {offsets = [0, 64], sizes = [1, 32], strides = [1, 1]} : vector<1x128xf32> to vector<1x32xf32>
    %21 = vector.extract_strided_slice %16 {offsets = [0, 96], sizes = [1, 32], strides = [1, 1]} : vector<1x128xf32> to vector<1x32xf32>
    %22 = arith.mulf %19, %8 : vector<1x32xf32>
    %23 = arith.mulf %18, %20 : vector<1x32xf32>
    %24 = arith.addf %22, %23 : vector<1x32xf32>
    %25 = math.tanh %24 : vector<1x32xf32>
    %26 = arith.mulf %21, %25 : vector<1x32xf32>
    %27 = vector.extract_strided_slice %6 {offsets = [1, 0], sizes = [1, 128], strides = [1, 1]} : vector<8x128xf32> to vector<1x128xf32>
    %cst_11 = arith.constant dense<0.000000e+00> : vector<1x128xf32>
    %28 = tpu.matmul %26, %1, %cst_11 {dimension_numbers = #tpu.dot_dimension_numbers<[1], [0], [0], [1], [0, 0, 1, 1], [], []>} : vector<1x32xf32>, vector<32x128xf32>, vector<1x128xf32> -> vector<1x128xf32>
    %29 = arith.addf %27, %28 : vector<1x128xf32>
    %30 = arith.negf %29 : vector<1x128xf32>
    %31 = math.exp %30 : vector<1x128xf32>
    %cst_12 = arith.constant 1.000000e+00 : f32
    %32 = vector.broadcast %cst_12 : f32 to vector<1x128xf32>
    %33 = arith.addf %32, %31 : vector<1x128xf32>
    %34 = arith.divf %32, %33 : vector<1x128xf32>
    %35 = math.tanh %29 : vector<1x128xf32>
    %36 = vector.extract_strided_slice %34 {offsets = [0, 0], sizes = [1, 32], strides = [1, 1]} : vector<1x128xf32> to vector<1x32xf32>
    %37 = vector.extract_strided_slice %34 {offsets = [0, 32], sizes = [1, 32], strides = [1, 1]} : vector<1x128xf32> to vector<1x32xf32>
    %38 = vector.extract_strided_slice %35 {offsets = [0, 64], sizes = [1, 32], strides = [1, 1]} : vector<1x128xf32> to vector<1x32xf32>
    %39 = vector.extract_strided_slice %34 {offsets = [0, 96], sizes = [1, 32], strides = [1, 1]} : vector<1x128xf32> to vector<1x32xf32>
    %40 = arith.mulf %37, %24 : vector<1x32xf32>
    %41 = arith.mulf %36, %38 : vector<1x32xf32>
    %42 = arith.addf %40, %41 : vector<1x32xf32>
    %43 = math.tanh %42 : vector<1x32xf32>
    %44 = arith.mulf %39, %43 : vector<1x32xf32>
    %45 = vector.extract_strided_slice %6 {offsets = [2, 0], sizes = [1, 128], strides = [1, 1]} : vector<8x128xf32> to vector<1x128xf32>
    %cst_13 = arith.constant dense<0.000000e+00> : vector<1x128xf32>
    %46 = tpu.matmul %44, %1, %cst_13 {dimension_numbers = #tpu.dot_dimension_numbers<[1], [0], [0], [1], [0, 0, 1, 1], [], []>} : vector<1x32xf32>, vector<32x128xf32>, vector<1x128xf32> -> vector<1x128xf32>
    %47 = arith.addf %45, %46 : vector<1x128xf32>
    %48 = arith.negf %47 : vector<1x128xf32>
    %49 = math.exp %48 : vector<1x128xf32>
    %cst_14 = arith.constant 1.000000e+00 : f32
    %50 = vector.broadcast %cst_14 : f32 to vector<1x128xf32>
    %51 = arith.addf %50, %49 : vector<1x128xf32>
    %52 = arith.divf %50, %51 : vector<1x128xf32>
    %53 = math.tanh %47 : vector<1x128xf32>
    %54 = vector.extract_strided_slice %52 {offsets = [0, 0], sizes = [1, 32], strides = [1, 1]} : vector<1x128xf32> to vector<1x32xf32>
    %55 = vector.extract_strided_slice %52 {offsets = [0, 32], sizes = [1, 32], strides = [1, 1]} : vector<1x128xf32> to vector<1x32xf32>
    %56 = vector.extract_strided_slice %53 {offsets = [0, 64], sizes = [1, 32], strides = [1, 1]} : vector<1x128xf32> to vector<1x32xf32>
    %57 = vector.extract_strided_slice %52 {offsets = [0, 96], sizes = [1, 32], strides = [1, 1]} : vector<1x128xf32> to vector<1x32xf32>
    %58 = arith.mulf %55, %42 : vector<1x32xf32>
    %59 = arith.mulf %54, %56 : vector<1x32xf32>
    %60 = arith.addf %58, %59 : vector<1x32xf32>
    %61 = math.tanh %60 : vector<1x32xf32>
    %62 = arith.mulf %57, %61 : vector<1x32xf32>
    %63 = vector.extract_strided_slice %6 {offsets = [3, 0], sizes = [1, 128], strides = [1, 1]} : vector<8x128xf32> to vector<1x128xf32>
    %cst_15 = arith.constant dense<0.000000e+00> : vector<1x128xf32>
    %64 = tpu.matmul %62, %1, %cst_15 {dimension_numbers = #tpu.dot_dimension_numbers<[1], [0], [0], [1], [0, 0, 1, 1], [], []>} : vector<1x32xf32>, vector<32x128xf32>, vector<1x128xf32> -> vector<1x128xf32>
    %65 = arith.addf %63, %64 : vector<1x128xf32>
    %66 = arith.negf %65 : vector<1x128xf32>
    %67 = math.exp %66 : vector<1x128xf32>
    %cst_16 = arith.constant 1.000000e+00 : f32
    %68 = vector.broadcast %cst_16 : f32 to vector<1x128xf32>
    %69 = arith.addf %68, %67 : vector<1x128xf32>
    %70 = arith.divf %68, %69 : vector<1x128xf32>
    %71 = math.tanh %65 : vector<1x128xf32>
    %72 = vector.extract_strided_slice %70 {offsets = [0, 0], sizes = [1, 32], strides = [1, 1]} : vector<1x128xf32> to vector<1x32xf32>
    %73 = vector.extract_strided_slice %70 {offsets = [0, 32], sizes = [1, 32], strides = [1, 1]} : vector<1x128xf32> to vector<1x32xf32>
    %74 = vector.extract_strided_slice %71 {offsets = [0, 64], sizes = [1, 32], strides = [1, 1]} : vector<1x128xf32> to vector<1x32xf32>
    %75 = vector.extract_strided_slice %70 {offsets = [0, 96], sizes = [1, 32], strides = [1, 1]} : vector<1x128xf32> to vector<1x32xf32>
    %76 = arith.mulf %73, %60 : vector<1x32xf32>
    %77 = arith.mulf %72, %74 : vector<1x32xf32>
    %78 = arith.addf %76, %77 : vector<1x32xf32>
    %79 = math.tanh %78 : vector<1x32xf32>
    %80 = arith.mulf %75, %79 : vector<1x32xf32>
    %81 = vector.extract_strided_slice %6 {offsets = [4, 0], sizes = [1, 128], strides = [1, 1]} : vector<8x128xf32> to vector<1x128xf32>
    %cst_17 = arith.constant dense<0.000000e+00> : vector<1x128xf32>
    %82 = tpu.matmul %80, %1, %cst_17 {dimension_numbers = #tpu.dot_dimension_numbers<[1], [0], [0], [1], [0, 0, 1, 1], [], []>} : vector<1x32xf32>, vector<32x128xf32>, vector<1x128xf32> -> vector<1x128xf32>
    %83 = arith.addf %81, %82 : vector<1x128xf32>
    %84 = arith.negf %83 : vector<1x128xf32>
    %85 = math.exp %84 : vector<1x128xf32>
    %cst_18 = arith.constant 1.000000e+00 : f32
    %86 = vector.broadcast %cst_18 : f32 to vector<1x128xf32>
    %87 = arith.addf %86, %85 : vector<1x128xf32>
    %88 = arith.divf %86, %87 : vector<1x128xf32>
    %89 = math.tanh %83 : vector<1x128xf32>
    %90 = vector.extract_strided_slice %88 {offsets = [0, 0], sizes = [1, 32], strides = [1, 1]} : vector<1x128xf32> to vector<1x32xf32>
    %91 = vector.extract_strided_slice %88 {offsets = [0, 32], sizes = [1, 32], strides = [1, 1]} : vector<1x128xf32> to vector<1x32xf32>
    %92 = vector.extract_strided_slice %89 {offsets = [0, 64], sizes = [1, 32], strides = [1, 1]} : vector<1x128xf32> to vector<1x32xf32>
    %93 = vector.extract_strided_slice %88 {offsets = [0, 96], sizes = [1, 32], strides = [1, 1]} : vector<1x128xf32> to vector<1x32xf32>
    %94 = arith.mulf %91, %78 : vector<1x32xf32>
    %95 = arith.mulf %90, %92 : vector<1x32xf32>
    %96 = arith.addf %94, %95 : vector<1x32xf32>
    %97 = math.tanh %96 : vector<1x32xf32>
    %98 = arith.mulf %93, %97 : vector<1x32xf32>
    %99 = vector.extract_strided_slice %6 {offsets = [5, 0], sizes = [1, 128], strides = [1, 1]} : vector<8x128xf32> to vector<1x128xf32>
    %cst_19 = arith.constant dense<0.000000e+00> : vector<1x128xf32>
    %100 = tpu.matmul %98, %1, %cst_19 {dimension_numbers = #tpu.dot_dimension_numbers<[1], [0], [0], [1], [0, 0, 1, 1], [], []>} : vector<1x32xf32>, vector<32x128xf32>, vector<1x128xf32> -> vector<1x128xf32>
    %101 = arith.addf %99, %100 : vector<1x128xf32>
    %102 = arith.negf %101 : vector<1x128xf32>
    %103 = math.exp %102 : vector<1x128xf32>
    %cst_20 = arith.constant 1.000000e+00 : f32
    %104 = vector.broadcast %cst_20 : f32 to vector<1x128xf32>
    %105 = arith.addf %104, %103 : vector<1x128xf32>
    %106 = arith.divf %104, %105 : vector<1x128xf32>
    %107 = math.tanh %101 : vector<1x128xf32>
    %108 = vector.extract_strided_slice %106 {offsets = [0, 0], sizes = [1, 32], strides = [1, 1]} : vector<1x128xf32> to vector<1x32xf32>
    %109 = vector.extract_strided_slice %106 {offsets = [0, 32], sizes = [1, 32], strides = [1, 1]} : vector<1x128xf32> to vector<1x32xf32>
    %110 = vector.extract_strided_slice %107 {offsets = [0, 64], sizes = [1, 32], strides = [1, 1]} : vector<1x128xf32> to vector<1x32xf32>
    %111 = vector.extract_strided_slice %106 {offsets = [0, 96], sizes = [1, 32], strides = [1, 1]} : vector<1x128xf32> to vector<1x32xf32>
    %112 = arith.mulf %109, %96 : vector<1x32xf32>
    %113 = arith.mulf %108, %110 : vector<1x32xf32>
    %114 = arith.addf %112, %113 : vector<1x32xf32>
    %115 = math.tanh %114 : vector<1x32xf32>
    %116 = arith.mulf %111, %115 : vector<1x32xf32>
    %117 = vector.extract_strided_slice %6 {offsets = [6, 0], sizes = [1, 128], strides = [1, 1]} : vector<8x128xf32> to vector<1x128xf32>
    %cst_21 = arith.constant dense<0.000000e+00> : vector<1x128xf32>
    %118 = tpu.matmul %116, %1, %cst_21 {dimension_numbers = #tpu.dot_dimension_numbers<[1], [0], [0], [1], [0, 0, 1, 1], [], []>} : vector<1x32xf32>, vector<32x128xf32>, vector<1x128xf32> -> vector<1x128xf32>
    %119 = arith.addf %117, %118 : vector<1x128xf32>
    %120 = arith.negf %119 : vector<1x128xf32>
    %121 = math.exp %120 : vector<1x128xf32>
    %cst_22 = arith.constant 1.000000e+00 : f32
    %122 = vector.broadcast %cst_22 : f32 to vector<1x128xf32>
    %123 = arith.addf %122, %121 : vector<1x128xf32>
    %124 = arith.divf %122, %123 : vector<1x128xf32>
    %125 = math.tanh %119 : vector<1x128xf32>
    %126 = vector.extract_strided_slice %124 {offsets = [0, 0], sizes = [1, 32], strides = [1, 1]} : vector<1x128xf32> to vector<1x32xf32>
    %127 = vector.extract_strided_slice %124 {offsets = [0, 32], sizes = [1, 32], strides = [1, 1]} : vector<1x128xf32> to vector<1x32xf32>
    %128 = vector.extract_strided_slice %125 {offsets = [0, 64], sizes = [1, 32], strides = [1, 1]} : vector<1x128xf32> to vector<1x32xf32>
    %129 = vector.extract_strided_slice %124 {offsets = [0, 96], sizes = [1, 32], strides = [1, 1]} : vector<1x128xf32> to vector<1x32xf32>
    %130 = arith.mulf %127, %114 : vector<1x32xf32>
    %131 = arith.mulf %126, %128 : vector<1x32xf32>
    %132 = arith.addf %130, %131 : vector<1x32xf32>
    %133 = math.tanh %132 : vector<1x32xf32>
    %134 = arith.mulf %129, %133 : vector<1x32xf32>
    %135 = vector.extract_strided_slice %6 {offsets = [7, 0], sizes = [1, 128], strides = [1, 1]} : vector<8x128xf32> to vector<1x128xf32>
    %cst_23 = arith.constant dense<0.000000e+00> : vector<1x128xf32>
    %136 = tpu.matmul %134, %1, %cst_23 {dimension_numbers = #tpu.dot_dimension_numbers<[1], [0], [0], [1], [0, 0, 1, 1], [], []>} : vector<1x32xf32>, vector<32x128xf32>, vector<1x128xf32> -> vector<1x128xf32>
    %137 = arith.addf %135, %136 : vector<1x128xf32>
    %138 = arith.negf %137 : vector<1x128xf32>
    %139 = math.exp %138 : vector<1x128xf32>
    %cst_24 = arith.constant 1.000000e+00 : f32
    %140 = vector.broadcast %cst_24 : f32 to vector<1x128xf32>
    %141 = arith.addf %140, %139 : vector<1x128xf32>
    %142 = arith.divf %140, %141 : vector<1x128xf32>
    %143 = math.tanh %137 : vector<1x128xf32>
    %144 = vector.extract_strided_slice %142 {offsets = [0, 0], sizes = [1, 32], strides = [1, 1]} : vector<1x128xf32> to vector<1x32xf32>
    %145 = vector.extract_strided_slice %142 {offsets = [0, 32], sizes = [1, 32], strides = [1, 1]} : vector<1x128xf32> to vector<1x32xf32>
    %146 = vector.extract_strided_slice %143 {offsets = [0, 64], sizes = [1, 32], strides = [1, 1]} : vector<1x128xf32> to vector<1x32xf32>
    %147 = vector.extract_strided_slice %142 {offsets = [0, 96], sizes = [1, 32], strides = [1, 1]} : vector<1x128xf32> to vector<1x32xf32>
    %148 = arith.mulf %145, %132 : vector<1x32xf32>
    %149 = arith.mulf %144, %146 : vector<1x32xf32>
    %150 = arith.addf %148, %149 : vector<1x32xf32>
    %151 = math.tanh %150 : vector<1x32xf32>
    %152 = arith.mulf %147, %151 : vector<1x32xf32>
    %153 = tpu.concatenate %26, %44, %62, %80, %98, %116, %134, %152 in 0 : vector<1x32xf32>, vector<1x32xf32>, vector<1x32xf32>, vector<1x32xf32>, vector<1x32xf32>, vector<1x32xf32>, vector<1x32xf32>, vector<1x32xf32> -> vector<8x32xf32>
    %c0_25 = arith.constant 0 : index
    %c0_26 = arith.constant 0 : index
    %154 = vector.load %arg5[%c0_25, %c0_26] : memref<32x128xf32, #tpu.memory_space<vmem>>, vector<32x128xf32>
    %c0_27 = arith.constant 0 : index
    %c0_28 = arith.constant 0 : index
    %155 = vector.load %arg4[%c0_27, %c0_28] : memref<32x128xf32, #tpu.memory_space<vmem>>, vector<32x128xf32>
    %cst_29 = arith.constant dense<0.000000e+00> : vector<8x128xf32>
    %156 = tpu.matmul %153, %155, %cst_29 {dimension_numbers = #tpu.dot_dimension_numbers<[1], [0], [0], [1], [0, 0, 1, 1], [], []>} : vector<8x32xf32>, vector<32x128xf32>, vector<8x128xf32> -> vector<8x128xf32>
    %c0_30 = arith.constant 0 : index
    %c0_31 = arith.constant 0 : index
    %157 = vector.load %arg6[%c0_30, %c0_31] : memref<1x128xf32, #tpu.memory_space<vmem>>, vector<1x128xf32>
    %158 = vector.broadcast %157 : vector<1x128xf32> to vector<8x128xf32>
    %159 = arith.addf %156, %158 : vector<8x128xf32>
    %cst_32 = arith.constant 0.000000e+00 : f32
    %160 = vector.broadcast %cst_32 : f32 to vector<1x32xf32>
    %cst_33 = arith.constant 0.000000e+00 : f32
    %161 = vector.broadcast %cst_33 : f32 to vector<1x32xf32>
    %162 = vector.extract_strided_slice %159 {offsets = [0, 0], sizes = [1, 128], strides = [1, 1]} : vector<8x128xf32> to vector<1x128xf32>
    %cst_34 = arith.constant dense<0.000000e+00> : vector<1x128xf32>
    %163 = tpu.matmul %160, %154, %cst_34 {dimension_numbers = #tpu.dot_dimension_numbers<[1], [0], [0], [1], [0, 0, 1, 1], [], []>} : vector<1x32xf32>, vector<32x128xf32>, vector<1x128xf32> -> vector<1x128xf32>
    %164 = arith.addf %162, %163 : vector<1x128xf32>
    %165 = arith.negf %164 : vector<1x128xf32>
    %166 = math.exp %165 : vector<1x128xf32>
    %cst_35 = arith.constant 1.000000e+00 : f32
    %167 = vector.broadcast %cst_35 : f32 to vector<1x128xf32>
    %168 = arith.addf %167, %166 : vector<1x128xf32>
    %169 = arith.divf %167, %168 : vector<1x128xf32>
    %170 = math.tanh %164 : vector<1x128xf32>
    %171 = vector.extract_strided_slice %169 {offsets = [0, 0], sizes = [1, 32], strides = [1, 1]} : vector<1x128xf32> to vector<1x32xf32>
    %172 = vector.extract_strided_slice %169 {offsets = [0, 32], sizes = [1, 32], strides = [1, 1]} : vector<1x128xf32> to vector<1x32xf32>
    %173 = vector.extract_strided_slice %170 {offsets = [0, 64], sizes = [1, 32], strides = [1, 1]} : vector<1x128xf32> to vector<1x32xf32>
    %174 = vector.extract_strided_slice %169 {offsets = [0, 96], sizes = [1, 32], strides = [1, 1]} : vector<1x128xf32> to vector<1x32xf32>
    %175 = arith.mulf %172, %161 : vector<1x32xf32>
    %176 = arith.mulf %171, %173 : vector<1x32xf32>
    %177 = arith.addf %175, %176 : vector<1x32xf32>
    %178 = math.tanh %177 : vector<1x32xf32>
    %179 = arith.mulf %174, %178 : vector<1x32xf32>
    %180 = vector.extract_strided_slice %159 {offsets = [1, 0], sizes = [1, 128], strides = [1, 1]} : vector<8x128xf32> to vector<1x128xf32>
    %cst_36 = arith.constant dense<0.000000e+00> : vector<1x128xf32>
    %181 = tpu.matmul %179, %154, %cst_36 {dimension_numbers = #tpu.dot_dimension_numbers<[1], [0], [0], [1], [0, 0, 1, 1], [], []>} : vector<1x32xf32>, vector<32x128xf32>, vector<1x128xf32> -> vector<1x128xf32>
    %182 = arith.addf %180, %181 : vector<1x128xf32>
    %183 = arith.negf %182 : vector<1x128xf32>
    %184 = math.exp %183 : vector<1x128xf32>
    %cst_37 = arith.constant 1.000000e+00 : f32
    %185 = vector.broadcast %cst_37 : f32 to vector<1x128xf32>
    %186 = arith.addf %185, %184 : vector<1x128xf32>
    %187 = arith.divf %185, %186 : vector<1x128xf32>
    %188 = math.tanh %182 : vector<1x128xf32>
    %189 = vector.extract_strided_slice %187 {offsets = [0, 0], sizes = [1, 32], strides = [1, 1]} : vector<1x128xf32> to vector<1x32xf32>
    %190 = vector.extract_strided_slice %187 {offsets = [0, 32], sizes = [1, 32], strides = [1, 1]} : vector<1x128xf32> to vector<1x32xf32>
    %191 = vector.extract_strided_slice %188 {offsets = [0, 64], sizes = [1, 32], strides = [1, 1]} : vector<1x128xf32> to vector<1x32xf32>
    %192 = vector.extract_strided_slice %187 {offsets = [0, 96], sizes = [1, 32], strides = [1, 1]} : vector<1x128xf32> to vector<1x32xf32>
    %193 = arith.mulf %190, %177 : vector<1x32xf32>
    %194 = arith.mulf %189, %191 : vector<1x32xf32>
    %195 = arith.addf %193, %194 : vector<1x32xf32>
    %196 = math.tanh %195 : vector<1x32xf32>
    %197 = arith.mulf %192, %196 : vector<1x32xf32>
    %198 = vector.extract_strided_slice %159 {offsets = [2, 0], sizes = [1, 128], strides = [1, 1]} : vector<8x128xf32> to vector<1x128xf32>
    %cst_38 = arith.constant dense<0.000000e+00> : vector<1x128xf32>
    %199 = tpu.matmul %197, %154, %cst_38 {dimension_numbers = #tpu.dot_dimension_numbers<[1], [0], [0], [1], [0, 0, 1, 1], [], []>} : vector<1x32xf32>, vector<32x128xf32>, vector<1x128xf32> -> vector<1x128xf32>
    %200 = arith.addf %198, %199 : vector<1x128xf32>
    %201 = arith.negf %200 : vector<1x128xf32>
    %202 = math.exp %201 : vector<1x128xf32>
    %cst_39 = arith.constant 1.000000e+00 : f32
    %203 = vector.broadcast %cst_39 : f32 to vector<1x128xf32>
    %204 = arith.addf %203, %202 : vector<1x128xf32>
    %205 = arith.divf %203, %204 : vector<1x128xf32>
    %206 = math.tanh %200 : vector<1x128xf32>
    %207 = vector.extract_strided_slice %205 {offsets = [0, 0], sizes = [1, 32], strides = [1, 1]} : vector<1x128xf32> to vector<1x32xf32>
    %208 = vector.extract_strided_slice %205 {offsets = [0, 32], sizes = [1, 32], strides = [1, 1]} : vector<1x128xf32> to vector<1x32xf32>
    %209 = vector.extract_strided_slice %206 {offsets = [0, 64], sizes = [1, 32], strides = [1, 1]} : vector<1x128xf32> to vector<1x32xf32>
    %210 = vector.extract_strided_slice %205 {offsets = [0, 96], sizes = [1, 32], strides = [1, 1]} : vector<1x128xf32> to vector<1x32xf32>
    %211 = arith.mulf %208, %195 : vector<1x32xf32>
    %212 = arith.mulf %207, %209 : vector<1x32xf32>
    %213 = arith.addf %211, %212 : vector<1x32xf32>
    %214 = math.tanh %213 : vector<1x32xf32>
    %215 = arith.mulf %210, %214 : vector<1x32xf32>
    %216 = vector.extract_strided_slice %159 {offsets = [3, 0], sizes = [1, 128], strides = [1, 1]} : vector<8x128xf32> to vector<1x128xf32>
    %cst_40 = arith.constant dense<0.000000e+00> : vector<1x128xf32>
    %217 = tpu.matmul %215, %154, %cst_40 {dimension_numbers = #tpu.dot_dimension_numbers<[1], [0], [0], [1], [0, 0, 1, 1], [], []>} : vector<1x32xf32>, vector<32x128xf32>, vector<1x128xf32> -> vector<1x128xf32>
    %218 = arith.addf %216, %217 : vector<1x128xf32>
    %219 = arith.negf %218 : vector<1x128xf32>
    %220 = math.exp %219 : vector<1x128xf32>
    %cst_41 = arith.constant 1.000000e+00 : f32
    %221 = vector.broadcast %cst_41 : f32 to vector<1x128xf32>
    %222 = arith.addf %221, %220 : vector<1x128xf32>
    %223 = arith.divf %221, %222 : vector<1x128xf32>
    %224 = math.tanh %218 : vector<1x128xf32>
    %225 = vector.extract_strided_slice %223 {offsets = [0, 0], sizes = [1, 32], strides = [1, 1]} : vector<1x128xf32> to vector<1x32xf32>
    %226 = vector.extract_strided_slice %223 {offsets = [0, 32], sizes = [1, 32], strides = [1, 1]} : vector<1x128xf32> to vector<1x32xf32>
    %227 = vector.extract_strided_slice %224 {offsets = [0, 64], sizes = [1, 32], strides = [1, 1]} : vector<1x128xf32> to vector<1x32xf32>
    %228 = vector.extract_strided_slice %223 {offsets = [0, 96], sizes = [1, 32], strides = [1, 1]} : vector<1x128xf32> to vector<1x32xf32>
    %229 = arith.mulf %226, %213 : vector<1x32xf32>
    %230 = arith.mulf %225, %227 : vector<1x32xf32>
    %231 = arith.addf %229, %230 : vector<1x32xf32>
    %232 = math.tanh %231 : vector<1x32xf32>
    %233 = arith.mulf %228, %232 : vector<1x32xf32>
    %234 = vector.extract_strided_slice %159 {offsets = [4, 0], sizes = [1, 128], strides = [1, 1]} : vector<8x128xf32> to vector<1x128xf32>
    %cst_42 = arith.constant dense<0.000000e+00> : vector<1x128xf32>
    %235 = tpu.matmul %233, %154, %cst_42 {dimension_numbers = #tpu.dot_dimension_numbers<[1], [0], [0], [1], [0, 0, 1, 1], [], []>} : vector<1x32xf32>, vector<32x128xf32>, vector<1x128xf32> -> vector<1x128xf32>
    %236 = arith.addf %234, %235 : vector<1x128xf32>
    %237 = arith.negf %236 : vector<1x128xf32>
    %238 = math.exp %237 : vector<1x128xf32>
    %cst_43 = arith.constant 1.000000e+00 : f32
    %239 = vector.broadcast %cst_43 : f32 to vector<1x128xf32>
    %240 = arith.addf %239, %238 : vector<1x128xf32>
    %241 = arith.divf %239, %240 : vector<1x128xf32>
    %242 = math.tanh %236 : vector<1x128xf32>
    %243 = vector.extract_strided_slice %241 {offsets = [0, 0], sizes = [1, 32], strides = [1, 1]} : vector<1x128xf32> to vector<1x32xf32>
    %244 = vector.extract_strided_slice %241 {offsets = [0, 32], sizes = [1, 32], strides = [1, 1]} : vector<1x128xf32> to vector<1x32xf32>
    %245 = vector.extract_strided_slice %242 {offsets = [0, 64], sizes = [1, 32], strides = [1, 1]} : vector<1x128xf32> to vector<1x32xf32>
    %246 = vector.extract_strided_slice %241 {offsets = [0, 96], sizes = [1, 32], strides = [1, 1]} : vector<1x128xf32> to vector<1x32xf32>
    %247 = arith.mulf %244, %231 : vector<1x32xf32>
    %248 = arith.mulf %243, %245 : vector<1x32xf32>
    %249 = arith.addf %247, %248 : vector<1x32xf32>
    %250 = math.tanh %249 : vector<1x32xf32>
    %251 = arith.mulf %246, %250 : vector<1x32xf32>
    %252 = vector.extract_strided_slice %159 {offsets = [5, 0], sizes = [1, 128], strides = [1, 1]} : vector<8x128xf32> to vector<1x128xf32>
    %cst_44 = arith.constant dense<0.000000e+00> : vector<1x128xf32>
    %253 = tpu.matmul %251, %154, %cst_44 {dimension_numbers = #tpu.dot_dimension_numbers<[1], [0], [0], [1], [0, 0, 1, 1], [], []>} : vector<1x32xf32>, vector<32x128xf32>, vector<1x128xf32> -> vector<1x128xf32>
    %254 = arith.addf %252, %253 : vector<1x128xf32>
    %255 = arith.negf %254 : vector<1x128xf32>
    %256 = math.exp %255 : vector<1x128xf32>
    %cst_45 = arith.constant 1.000000e+00 : f32
    %257 = vector.broadcast %cst_45 : f32 to vector<1x128xf32>
    %258 = arith.addf %257, %256 : vector<1x128xf32>
    %259 = arith.divf %257, %258 : vector<1x128xf32>
    %260 = math.tanh %254 : vector<1x128xf32>
    %261 = vector.extract_strided_slice %259 {offsets = [0, 0], sizes = [1, 32], strides = [1, 1]} : vector<1x128xf32> to vector<1x32xf32>
    %262 = vector.extract_strided_slice %259 {offsets = [0, 32], sizes = [1, 32], strides = [1, 1]} : vector<1x128xf32> to vector<1x32xf32>
    %263 = vector.extract_strided_slice %260 {offsets = [0, 64], sizes = [1, 32], strides = [1, 1]} : vector<1x128xf32> to vector<1x32xf32>
    %264 = vector.extract_strided_slice %259 {offsets = [0, 96], sizes = [1, 32], strides = [1, 1]} : vector<1x128xf32> to vector<1x32xf32>
    %265 = arith.mulf %262, %249 : vector<1x32xf32>
    %266 = arith.mulf %261, %263 : vector<1x32xf32>
    %267 = arith.addf %265, %266 : vector<1x32xf32>
    %268 = math.tanh %267 : vector<1x32xf32>
    %269 = arith.mulf %264, %268 : vector<1x32xf32>
    %270 = vector.extract_strided_slice %159 {offsets = [6, 0], sizes = [1, 128], strides = [1, 1]} : vector<8x128xf32> to vector<1x128xf32>
    %cst_46 = arith.constant dense<0.000000e+00> : vector<1x128xf32>
    %271 = tpu.matmul %269, %154, %cst_46 {dimension_numbers = #tpu.dot_dimension_numbers<[1], [0], [0], [1], [0, 0, 1, 1], [], []>} : vector<1x32xf32>, vector<32x128xf32>, vector<1x128xf32> -> vector<1x128xf32>
    %272 = arith.addf %270, %271 : vector<1x128xf32>
    %273 = arith.negf %272 : vector<1x128xf32>
    %274 = math.exp %273 : vector<1x128xf32>
    %cst_47 = arith.constant 1.000000e+00 : f32
    %275 = vector.broadcast %cst_47 : f32 to vector<1x128xf32>
    %276 = arith.addf %275, %274 : vector<1x128xf32>
    %277 = arith.divf %275, %276 : vector<1x128xf32>
    %278 = math.tanh %272 : vector<1x128xf32>
    %279 = vector.extract_strided_slice %277 {offsets = [0, 0], sizes = [1, 32], strides = [1, 1]} : vector<1x128xf32> to vector<1x32xf32>
    %280 = vector.extract_strided_slice %277 {offsets = [0, 32], sizes = [1, 32], strides = [1, 1]} : vector<1x128xf32> to vector<1x32xf32>
    %281 = vector.extract_strided_slice %278 {offsets = [0, 64], sizes = [1, 32], strides = [1, 1]} : vector<1x128xf32> to vector<1x32xf32>
    %282 = vector.extract_strided_slice %277 {offsets = [0, 96], sizes = [1, 32], strides = [1, 1]} : vector<1x128xf32> to vector<1x32xf32>
    %283 = arith.mulf %280, %267 : vector<1x32xf32>
    %284 = arith.mulf %279, %281 : vector<1x32xf32>
    %285 = arith.addf %283, %284 : vector<1x32xf32>
    %286 = math.tanh %285 : vector<1x32xf32>
    %287 = arith.mulf %282, %286 : vector<1x32xf32>
    %288 = vector.extract_strided_slice %159 {offsets = [7, 0], sizes = [1, 128], strides = [1, 1]} : vector<8x128xf32> to vector<1x128xf32>
    %cst_48 = arith.constant dense<0.000000e+00> : vector<1x128xf32>
    %289 = tpu.matmul %287, %154, %cst_48 {dimension_numbers = #tpu.dot_dimension_numbers<[1], [0], [0], [1], [0, 0, 1, 1], [], []>} : vector<1x32xf32>, vector<32x128xf32>, vector<1x128xf32> -> vector<1x128xf32>
    %290 = arith.addf %288, %289 : vector<1x128xf32>
    %291 = arith.negf %290 : vector<1x128xf32>
    %292 = math.exp %291 : vector<1x128xf32>
    %cst_49 = arith.constant 1.000000e+00 : f32
    %293 = vector.broadcast %cst_49 : f32 to vector<1x128xf32>
    %294 = arith.addf %293, %292 : vector<1x128xf32>
    %295 = arith.divf %293, %294 : vector<1x128xf32>
    %296 = math.tanh %290 : vector<1x128xf32>
    %297 = vector.extract_strided_slice %295 {offsets = [0, 0], sizes = [1, 32], strides = [1, 1]} : vector<1x128xf32> to vector<1x32xf32>
    %298 = vector.extract_strided_slice %295 {offsets = [0, 32], sizes = [1, 32], strides = [1, 1]} : vector<1x128xf32> to vector<1x32xf32>
    %299 = vector.extract_strided_slice %296 {offsets = [0, 64], sizes = [1, 32], strides = [1, 1]} : vector<1x128xf32> to vector<1x32xf32>
    %300 = vector.extract_strided_slice %295 {offsets = [0, 96], sizes = [1, 32], strides = [1, 1]} : vector<1x128xf32> to vector<1x32xf32>
    %301 = arith.mulf %298, %285 : vector<1x32xf32>
    %302 = arith.mulf %297, %299 : vector<1x32xf32>
    %303 = arith.addf %301, %302 : vector<1x32xf32>
    %304 = math.tanh %303 : vector<1x32xf32>
    %305 = arith.mulf %300, %304 : vector<1x32xf32>
    %306 = tpu.concatenate %179, %197, %215, %233, %251, %269, %287, %305 in 0 : vector<1x32xf32>, vector<1x32xf32>, vector<1x32xf32>, vector<1x32xf32>, vector<1x32xf32>, vector<1x32xf32>, vector<1x32xf32>, vector<1x32xf32> -> vector<8x32xf32>
    %c0_50 = arith.constant 0 : index
    %c0_51 = arith.constant 0 : index
    %307 = vector.load %arg7[%c0_50, %c0_51] : memref<32x8xf32, #tpu.memory_space<vmem>>, vector<32x8xf32>
    %cst_52 = arith.constant dense<0.000000e+00> : vector<8x8xf32>
    %308 = tpu.matmul %306, %307, %cst_52 {dimension_numbers = #tpu.dot_dimension_numbers<[1], [0], [0], [1], [0, 0, 1, 1], [], []>} : vector<8x32xf32>, vector<32x8xf32>, vector<8x8xf32> -> vector<8x8xf32>
    %c0_53 = arith.constant 0 : index
    %c0_54 = arith.constant 0 : index
    %309 = vector.load %arg8[%c0_53, %c0_54] : memref<1x8xf32, #tpu.memory_space<vmem>>, vector<1x8xf32>
    %310 = vector.broadcast %309 : vector<1x8xf32> to vector<8x8xf32>
    %311 = arith.addf %308, %310 : vector<8x8xf32>
    %c0_55 = arith.constant 0 : index
    %c0_56 = arith.constant 0 : index
    %312 = vector.load %arg9[%c0_55, %c0_56] : memref<8x4xf32, #tpu.memory_space<vmem>>, vector<8x4xf32>
    %cst_57 = arith.constant dense<0.000000e+00> : vector<8x4xf32>
    %313 = tpu.matmul %311, %312, %cst_57 {dimension_numbers = #tpu.dot_dimension_numbers<[1], [0], [0], [1], [0, 0, 1, 1], [], []>} : vector<8x8xf32>, vector<8x4xf32>, vector<8x4xf32> -> vector<8x4xf32>
    %c0_58 = arith.constant 0 : index
    %c0_59 = arith.constant 0 : index
    %314 = vector.load %arg10[%c0_58, %c0_59] : memref<1x4xf32, #tpu.memory_space<vmem>>, vector<1x4xf32>
    %315 = vector.broadcast %314 : vector<1x4xf32> to vector<8x4xf32>
    %316 = arith.addf %313, %315 : vector<8x4xf32>
    %c0_60 = arith.constant 0 : index
    %c0_61 = arith.constant 0 : index
    %317 = vector.load %arg11[%c0_60, %c0_61] : memref<8x4xf32, #tpu.memory_space<vmem>>, vector<8x4xf32>
    tpu.vector_store %arg11[%c0_60, %c0_61], %316 {strides = array<i32>} : memref<8x4xf32, #tpu.memory_space<vmem>>, vector<8x4xf32>,
    return
  }
}

</mosaic_0001>

<bundles_post_ra>
// kernel: tpu_custom_call.1
= control target key start
LH: loop header
LB: loop body
LE: loop exit
PB: predicated region body
PF: predicated region fallthrough
CT: control target
= control target key end

     0   :  { %16 = vsyncpa [#allocation3], 0  ;;  %s3134_s0 = inlined_call_operand.hbm [shape: f32[8,16], index: 0, kind: input, shape index: {}]   ;;  %s3135_s1 = inlined_call_operand.vmem [shape: f32[16,128], index: 1, kind: input, shape index: {}]   ;;  %s3136_s2 = inlined_call_operand.vmem [shape: f32[32,128], index: 2, kind: input, shape index: {}]   ;;  %s3137_s3 = inlined_call_operand.vmem [shape: f32[1,128], index: 3, kind: input, shape index: {}]   ;;  %s3138_s4 = inlined_call_operand.hbm [shape: f32[32,128], index: 4, kind: input, shape index: {}]   ;;  %s3139_s5 = inlined_call_operand.hbm [shape: f32[32,128], index: 5, kind: input, shape index: {}]   ;;  %s3140_s6 = inlined_call_operand.vmem [shape: f32[1,128], index: 6, kind: input, shape index: {}]   ;;  %s3141_s7 = inlined_call_operand.vmem [shape: f32[32,8], index: 7, kind: input, shape index: {}]   ;;  %s3142_s8 = inlined_call_operand.vmem [shape: f32[1,8], index: 8, kind: input, shape index: {}]   ;;  %s3143_s9 = inlined_call_operand.vmem [shape: f32[8,4], index: 9, kind: input, shape index: {}]   ;;  %s3144_s10 = inlined_call_operand.vmem [shape: f32[1,4], index: 10, kind: input, shape index: {}]   ;;  %s3145_s11 = inlined_call_operand.vmem [shape: f32[8,4], index: 11, kind: output, shape index: {}]  }
   0x1   :  { %17 = vsyncpa [#allocation5], 0  ;;  %s2686_s17 = smov [#allocation4]  }
   0x2   :  { %s39_s18 = sshll.u32 %s2686_s17, 4  ;;  %s40_s18 = int_to_ptr.vmem [resolvable:$true] %s39_s18 }
   0x3   :  { %s2630_s19 = scalar_lea.vmem %s40_s18, 512  ;;  %p2635_p1 = scmp.lt.s32.totalorder %s40_s18, %s40_s18 }
   0x4   :  { %p2631_p0 = scmp.ne.s32.totalorder %s40_s18, %s2630_s19  ;;  %p2636_p2 = scmp.lt.s32.totalorder %s2630_s19, %s2630_s19 }
   0x6   :  { %p2637_p3 = por %p2636_p2, %p2635_p1 }
   0x8   :  { %p2638_p4 = pnand %p2637_p3, %p2631_p0 }
   0xa   :  { %2641 = shalt.err (!%p2638_p4)
}
   0xb   :  { %s2687_s20 = smov 128   ;;  %s2688_s21 = smov 8  }
   0xc   :  { %45 = dma.hbm_to_vmem [thread:$0]  %s3138_s4, 512, %s40_s18, [#allocation5], %s2687_s20, %s2687_s20, %s2688_s21  }
   0xd   :  { %s2689_s24 = smov [#allocation2]   ;;  %s2690_s26 = smov [#allocation6]  }
   0xe   :  { %s24_s25 = sshll.u32 %s2689_s24, 4  ;;  %s51_s27 = sshll.u32 %s2690_s26, 4  ;;  %s25_s25 = int_to_ptr.vmem [resolvable:$true] %s24_s25  ;;  %s52_s27 = int_to_ptr.vmem [resolvable:$true] %s51_s27 }
   0xf   :  { %s2650_s28 = scalar_lea.vmem %s25_s25, 128  ;;  %p2655_p6 = scmp.lt.s32.totalorder %s25_s25, %s25_s25 }
  0x10   :  { %p2651_p5 = scmp.ne.s32.totalorder %s25_s25, %s2650_s28  ;;  %p2656_p7 = scmp.lt.s32.totalorder %s2650_s28, %s2650_s28 }
  0x12   :  { %p2657_p8 = por %p2656_p7, %p2655_p6 }
  0x14   :  { %p2658_p9 = pnand %p2657_p8, %p2651_p5 }
  0x16   :  { %2661 = shalt.err (!%p2658_p9)
}
  0x17   :  { %27 = dma.hbm_to_vmem [thread:$0]  %s3134_s0, 128, %s25_s25, [#allocation3]  }
  0x18   :  { %s2670_s12 = scalar_lea.vmem %s52_s27, 512  ;;  %p2675_p11 = scmp.lt.s32.totalorder %s52_s27, %s52_s27 }
  0x19   :  { %p2671_p10 = scmp.ne.s32.totalorder %s52_s27, %s2670_s12  ;;  %p2676_p12 = scmp.lt.s32.totalorder %s2670_s12, %s2670_s12 }
  0x1b   :  { %p2677_p13 = por %p2676_p12, %p2675_p11 }
  0x1d   :  { %p2678_p0 = pnand %p2677_p13, %p2671_p10 }
  0x1f   :  { %2681 = shalt.err (!%p2678_p0)
}
  0x20   :  { %57 = dma.hbm_to_vmem [thread:$0]  %s3139_s5, 512, %s52_s27, [#allocation5], %s2687_s20, %s2687_s20, %s2688_s21  }
  0x21   :  { %2682 = dma.done.wait [#allocation3], 128  }
  0x22   :  { %2683 = vsyncadd [#allocation3], 4294967168 }
  0x23   :  { %2684 = dma.done.wait [#allocation5], 1024  }
  0x24   :  { %2685 = vsyncadd [#allocation5], 4294966272  ;;  %v2691_v0 = vmov 0.0   ;;  %vm2692_vm0 = vmmov 0   ;;  %v83_v1 = vld [vmem:[%s3135_s1 + $0x8] sm:$0xff]  ;;  %v2776_v2 = vld [vmem:[%s3136_s2 + $0x18] sm:$0xff] }
  0x25   :  { %2275 = vmatprep.subr.mxu0 %v2691_v0  ;;  %2282 = vmatprep.subr.mxu1 %v2691_v0  ;;  %v82_v3 = vld [vmem:[%s3135_s1] sm:$0xff]  ;;  %v2785_v4 = vld [vmem:[%s3136_s2 + $0x10] sm:$0xff]  ;;  %vm91_vm1 = vcmask 130048   ;;  %v2792_v6 = vld [vmem:[%s3136_s2 + $0x8] sm:$0xff]  ;;  %s2693_s24 = smov 64   ;;  %vm165_vm2 = vcmask 261120  }
  0x26   :  { %2279 = vmatprep.mubr.msk.f32.mxu0 %vm2692_vm0, %v2691_v0  ;;  %2290 = vmatprep.mubr.msk.f32.mxu1 %vm2692_vm0, %v2691_v0  ;;  %v77_v5 = vld [vmem:[#allocation2] sm:$0xff]  ;;  %vm1012_vm3 = vcmask 1040384   ;;  %vm1014_vm4 = vcmask 1041408   ;;  %vm1016_vm5 = vcmask 1042432   ;;  %vm1018_vm6 = vcmask 1043456  }
  0x27   :  { %2276 = vmatpush3.msra.mxu0 %v83_v1  ;;  %2283 = vmatpush3.msra.mxu1 %v2776_v2  ;;  %v2799_v7 = vld [vmem:[%s3136_s2] sm:$0xff]  ;;  %vm1020_vm7 = vcmask 1044480   ;;  %vm1022_vm8 = vcmask 1045504   ;;  %vm1024_vm9 = vcmask 1046528   ;;  %vm2060_vm10 = vcmask 64512  }
  0x28   :  { %2277 = vmatprep.subr.mxu0 %v2691_v0  ;;  %2284 = vmatprep.subr.mxu1 %v2691_v0  ;;  %v2142_v8 = vld [vmem:[%s3137_s3] ss:$0 sm:$0xff]  ;;  %s2694_s3 = smov 32   ;;  %vm2134_vm11 = vcmask 31744  }
  0x29   :  { %2278 = vmatpush3.msra.mxu0 %v82_v3  ;;  %2285 = vmatpush3.msra.mxu1 %v2785_v4 }
  0x2a   :  { %2280 = vmatmul.mubr.msk.f32.vlgmr.msra.gmra.mxu0 %vm91_vm1, %v77_v5  ;;  %2286 = vmatprep.subr.mxu1 %v2691_v0 }
  0x2b   :  { %2287 = vmatpush3.msra.mxu1 %v2792_v6  ;;  %2293 = vmatprep.subr.mxu0 %v2691_v0 }
  0x2c   :  { %2288 = vmatprep.subr.mxu1 %v2691_v0  ;;  %2294 = vmatpush3.msra.mxu0 %v2776_v2 }
  0x2d   :  { %2289 = vmatpush3.msra.mxu1 %v2799_v7  ;;  %2295 = vmatprep.subr.mxu0 %v2691_v0 }
  0x2e   :  { %2291 = vmatmul.mubr.f32.vlgmr.msra.gmra.mxu1 %v2691_v0  ;;  %2296 = vmatpush3.msra.mxu0 %v2785_v4 }
  0x2f   :  { %2297 = vmatprep.subr.mxu0 %v2691_v0  ;;  %2301 = vmatprep.mubr.msk.f32.mxu0 %vm2692_vm0, %v2691_v0 }
  0x30   :  { %2298 = vmatpush3.msra.mxu0 %v2792_v6  ;;  %2304 = vmatprep.subr.mxu1 %v2691_v0 }
  0x31   :  { %2299 = vmatprep.subr.mxu0 %v2691_v0  ;;  %2305 = vmatpush3.msra.mxu1 %v2776_v2 }
  0x32   :  { %2300 = vmatpush3.msra.mxu0 %v2799_v7  ;;  %2306 = vmatprep.subr.mxu1 %v2691_v0 }
  0x33   :  { %2307 = vmatpush3.msra.mxu1 %v2785_v4  ;;  %2312 = vmatprep.mubr.msk.f32.mxu1 %vm2692_vm0, %v2691_v0 }
  0x34   :  { %2308 = vmatprep.subr.mxu1 %v2691_v0  ;;  %2315 = vmatprep.subr.mxu0 %v2691_v0 }
  0x35   :  { %2309 = vmatpush3.msra.mxu1 %v2792_v6 }
  0x36   :  { %2310 = vmatprep.subr.mxu1 %v2691_v0 }
  0x37   :  { %2311 = vmatpush3.msra.mxu1 %v2799_v7 }
  0x38   :  { %2326 = vmatprep.subr.mxu1 %v2691_v0 }
  0xea   :  { %v161_v9 = vpop.f32.mrf.mxu0 }
  0xeb   :  { %v2830_v10 = vadd.f32 %v2142_v8, %v161_v9 }
  0xec   :  { %v2281_v11 = vpop.f32.mrf.mxu0 }
  0xee   :  { %v235_v12 = vpop.f32.mrf.mxu1 }
  0xef   :  { %v239_v13 = vadd.f32 %v235_v12, %v2830_v10 }
  0xf0   :  { %v2292_v14 = vpop.f32.mrf.mxu1 }
  0xf1   :  { %2494 = vtanh.f32 %v239_v13  ;;  %v2144_v16 = vmul.f32 -1.442695, %v239_v13 }
  0xf3   :  { %2496 = vpow2.f32 %v2144_v16 }
  0xfe   :  { %v2495_v15 = vpop.eup %2494 }
  0xff   :  { %249 = vrot.lane.b32.xlu0 %v2495_v15, %s2693_s24 }
 0x100   :  { %v2497_v17 = vpop.eup %2496 }
 0x101   :  { %v243_v18 = vadd.f32 1.0, %v2497_v17 }
 0x103   :  { %2498 = vrcp.f32 %v243_v18 }
 0x110   :  { %v2499_v19 = vpop.eup %2498 }
 0x111   :  { %v247_v22 = vmul.f32 0.0, %v2499_v19 }
 0x171   :  { %v250_v20 = vpop.permute.xlu0 %249 }
 0x172   :  { %v252_v21 = vmul.f32 %v2499_v19, %v250_v20 }
 0x174   :  { %254 = vrot.lane.b32.xlu0 %v252_v21, %s2694_s3 }
 0x1e6   :  { %v255_v23 = vpop.permute.xlu0 %254 }
 0x1e7   :  { %v257_v24 = vadd.f32 %v255_v23, %v247_v22 }
 0x1e9   :  { %2500 = vtanh.f32 %v257_v24  ;;  %v351_v40 = vrot.slane %v257_v24, 7 }
 0x1f6   :  { %v2501_v25 = vpop.eup %2500 }
 0x1f7   :  { %260 = vrot.lane.b32.xlu1 %v2501_v25, %s2693_s24 }
 0x269   :  { %v261_v26 = vpop.permute.xlu1 %260 }
 0x26a   :  { %v2836_v27 = vmul.f32 %v2499_v19, %v261_v26 }
 0x26c   :  { %265 = vrot.lane.b32.xlu1 %v2836_v27, %s2694_s3 }
 0x2de   :  { %v266_v28 = vpop.permute.xlu1 %265 }
 0x2df   :  { %2302 = vmatmul.mubr.msk.f32.vlgmr.msra.gmra.mxu0 %vm165_vm2, %v266_v28 }
 0x2e0   :  { %2316 = vmatpush3.msra.mxu0 %v2776_v2  ;;  %2323 = vmatprep.mubr.msk.f32.mxu0 %vm2692_vm0, %v2691_v0 }
 0x2e1   :  { %2317 = vmatprep.subr.mxu0 %v2691_v0 }
 0x2e2   :  { %2318 = vmatpush3.msra.mxu0 %v2785_v4 }
 0x2e3   :  { %2319 = vmatprep.subr.mxu0 %v2691_v0 }
 0x2e4   :  { %2320 = vmatpush3.msra.mxu0 %v2792_v6 }
 0x2e5   :  { %2321 = vmatprep.subr.mxu0 %v2691_v0 }
 0x2e6   :  { %2322 = vmatpush3.msra.mxu0 %v2799_v7 }
 0x2e7   :  { %2337 = vmatprep.subr.mxu0 %v2691_v0 }
 0x39f   :  { %v335_v29 = vpop.f32.mrf.mxu0 }
 0x3a0   :  { %v340_v30 = vrot.slane %v335_v29, 7 }
 0x3a1   :  { %v2303_v31 = vpop.f32.mrf.mxu0 }
 0x3a2   :  { %v342_v32 = vadd.f32 %v340_v30, %v2830_v10 }
 0x3a4   :  { %2502 = vtanh.f32 %v342_v32  ;;  %v2146_v34 = vmul.f32 -1.442695, %v342_v32 }
 0x3a6   :  { %2504 = vpow2.f32 %v2146_v34 }
 0x3b1   :  { %v2503_v33 = vpop.eup %2502 }
 0x3b2   :  { %355 = vrot.lane.b32.xlu0 %v2503_v33, %s2693_s24 }
 0x3b3   :  { %v2505_v35 = vpop.eup %2504 }
 0x3b4   :  { %v346_v36 = vadd.f32 1.0, %v2505_v35 }
 0x3b6   :  { %2506 = vrcp.f32 %v346_v36 }
 0x3c3   :  { %v2507_v37 = vpop.eup %2506 }
 0x3c4   :  { %v353_v41 = vmul.f32 %v2507_v37, %v351_v40 }
 0x424   :  { %v356_v38 = vpop.permute.xlu0 %355 }
 0x425   :  { %v358_v39 = vmul.f32 %v2507_v37, %v356_v38 }
 0x427   :  { %360 = vrot.lane.b32.xlu1 %v358_v39, %s2694_s3 }
 0x499   :  { %v361_v42 = vpop.permute.xlu1 %360 }
 0x49a   :  { %v363_v43 = vadd.f32 %v361_v42, %v353_v41 }
 0x49c   :  { %2508 = vtanh.f32 %v363_v43  ;;  %v458_v60 = vrot.slane %v363_v43, 7 }
 0x4a9   :  { %v2509_v44 = vpop.eup %2508 }
 0x4aa   :  { %366 = vrot.lane.b32.xlu0 %v2509_v44, %s2693_s24 }
 0x51c   :  { %v367_v45 = vpop.permute.xlu0 %366 }
 0x51d   :  { %v369_v46 = vmul.f32 %v2507_v37, %v367_v45 }
 0x51f   :  { %v371_v47 = vrot.slane %v369_v46, 1  ;;  %v1013_v8 = vsel %vm1012_vm3, %v2836_v27, %v369_v46 }
 0x521   :  { %372 = vrot.lane.b32.xlu1 %v371_v47, %s2694_s3 }
 0x593   :  { %v373_v48 = vpop.permute.xlu1 %372 }
 0x594   :  { %2313 = vmatmul.mubr.msk.f32.vlgmr.msra.gmra.mxu1 %vm165_vm2, %v373_v48 }
 0x595   :  { %2327 = vmatpush3.msra.mxu1 %v2776_v2  ;;  %2334 = vmatprep.mubr.msk.f32.mxu1 %vm2692_vm0, %v2691_v0 }
 0x596   :  { %2328 = vmatprep.subr.mxu1 %v2691_v0 }
 0x597   :  { %2329 = vmatpush3.msra.mxu1 %v2785_v4 }
 0x598   :  { %2330 = vmatprep.subr.mxu1 %v2691_v0 }
 0x599   :  { %2331 = vmatpush3.msra.mxu1 %v2792_v6 }
 0x59a   :  { %2332 = vmatprep.subr.mxu1 %v2691_v0 }
 0x59b   :  { %2333 = vmatpush3.msra.mxu1 %v2799_v7 }
 0x59c   :  { %2348 = vmatprep.subr.mxu1 %v2691_v0 }
 0x654   :  { %v442_v49 = vpop.f32.mrf.mxu1 }
 0x655   :  { %v447_v50 = vrot.slane %v442_v49, 6 }
 0x656   :  { %v2314_v51 = vpop.f32.mrf.mxu1 }
 0x657   :  { %v449_v52 = vadd.f32 %v447_v50, %v2830_v10 }
 0x659   :  { %2510 = vtanh.f32 %v449_v52  ;;  %v2148_v54 = vmul.f32 -1.442695, %v449_v52 }
 0x65b   :  { %2512 = vpow2.f32 %v2148_v54 }
 0x666   :  { %v2511_v53 = vpop.eup %2510 }
 0x667   :  { %462 = vrot.lane.b32.xlu0 %v2511_v53, %s2693_s24 }
 0x668   :  { %v2513_v55 = vpop.eup %2512 }
 0x669   :  { %v453_v56 = vadd.f32 1.0, %v2513_v55 }
 0x66b   :  { %2514 = vrcp.f32 %v453_v56 }
 0x678   :  { %v2515_v57 = vpop.eup %2514 }
 0x679   :  { %v460_v61 = vmul.f32 %v2515_v57, %v458_v60 }
 0x6d9   :  { %v463_v58 = vpop.permute.xlu0 %462 }
 0x6da   :  { %v465_v59 = vmul.f32 %v2515_v57, %v463_v58 }
 0x6dc   :  { %467 = vrot.lane.b32.xlu1 %v465_v59, %s2694_s3 }
 0x74e   :  { %v468_v62 = vpop.permute.xlu1 %467 }
 0x74f   :  { %v470_v63 = vadd.f32 %v468_v62, %v460_v61 }
 0x751   :  { %2516 = vtanh.f32 %v470_v63  ;;  %v565_v24 = vrot.slane %v470_v63, 7 }
 0x75e   :  { %v2517_v1 = vpop.eup %2516 }
 0x75f   :  { %473 = vrot.lane.b32.xlu0 %v2517_v1, %s2693_s24 }
 0x7d1   :  { %v474_v3 = vpop.permute.xlu0 %473 }
 0x7d2   :  { %v476_v5 = vmul.f32 %v2515_v57, %v474_v3 }
 0x7d4   :  { %v478_v9 = vrot.slane %v476_v5, 2  ;;  %v1015_v11 = vsel %vm1014_vm4, %v1013_v8, %v476_v5 }
 0x7d6   :  { %479 = vrot.lane.b32.xlu1 %v478_v9, %s2694_s3 }
 0x848   :  { %v480_v12 = vpop.permute.xlu1 %479 }
 0x849   :  { %2324 = vmatmul.mubr.msk.f32.vlgmr.msra.gmra.mxu0 %vm165_vm2, %v480_v12 }
 0x84a   :  { %2338 = vmatpush3.msra.mxu0 %v2776_v2  ;;  %2345 = vmatprep.mubr.msk.f32.mxu0 %vm2692_vm0, %v2691_v0 }
 0x84b   :  { %2339 = vmatprep.subr.mxu0 %v2691_v0 }
 0x84c   :  { %2340 = vmatpush3.msra.mxu0 %v2785_v4 }
 0x84d   :  { %2341 = vmatprep.subr.mxu0 %v2691_v0 }
 0x84e   :  { %2342 = vmatpush3.msra.mxu0 %v2792_v6 }
 0x84f   :  { %2343 = vmatprep.subr.mxu0 %v2691_v0 }
 0x850   :  { %2344 = vmatpush3.msra.mxu0 %v2799_v7 }
 0x851   :  { %2359 = vmatprep.subr.mxu0 %v2691_v0 }
 0x909   :  { %v549_v13 = vpop.f32.mrf.mxu0 }
 0x90a   :  { %v554_v14 = vrot.slane %v549_v13, 5 }
 0x90b   :  { %v2325_v15 = vpop.f32.mrf.mxu0 }
 0x90c   :  { %v556_v16 = vadd.f32 %v554_v14, %v2830_v10 }
 0x90e   :  { %2518 = vtanh.f32 %v556_v16  ;;  %v2150_v18 = vmul.f32 -1.442695, %v556_v16 }
 0x910   :  { %2520 = vpow2.f32 %v2150_v18 }
 0x91b   :  { %v2519_v17 = vpop.eup %2518 }
 0x91c   :  { %569 = vrot.lane.b32.xlu0 %v2519_v17, %s2693_s24 }
 0x91d   :  { %v2521_v19 = vpop.eup %2520 }
 0x91e   :  { %v560_v20 = vadd.f32 1.0, %v2521_v19 }
 0x920   :  { %2522 = vrcp.f32 %v560_v20 }
 0x92d   :  { %v2523_v21 = vpop.eup %2522 }
 0x92e   :  { %v567_v25 = vmul.f32 %v2523_v21, %v565_v24 }
 0x98e   :  { %v570_v22 = vpop.permute.xlu0 %569 }
 0x98f   :  { %v572_v23 = vmul.f32 %v2523_v21, %v570_v22 }
 0x991   :  { %574 = vrot.lane.b32.xlu1 %v572_v23, %s2694_s3 }
 0xa03   :  { %v575_v26 = vpop.permute.xlu1 %574 }
 0xa04   :  { %v577_v27 = vadd.f32 %v575_v26, %v567_v25 }
 0xa06   :  { %2524 = vtanh.f32 %v577_v27  ;;  %v672_v45 = vrot.slane %v577_v27, 7 }
 0xa13   :  { %v2525_v28 = vpop.eup %2524 }
 0xa14   :  { %580 = vrot.lane.b32.xlu0 %v2525_v28, %s2693_s24 }
 0xa86   :  { %v581_v29 = vpop.permute.xlu0 %580 }
 0xa87   :  { %v583_v30 = vmul.f32 %v2523_v21, %v581_v29 }
 0xa89   :  { %v585_v31 = vrot.slane %v583_v30, 3  ;;  %v1017_v32 = vsel %vm1016_vm5, %v1015_v11, %v583_v30 }
 0xa8b   :  { %586 = vrot.lane.b32.xlu1 %v585_v31, %s2694_s3 }
 0xafd   :  { %v587_v33 = vpop.permute.xlu1 %586 }
 0xafe   :  { %2335 = vmatmul.mubr.msk.f32.vlgmr.msra.gmra.mxu1 %vm165_vm2, %v587_v33 }
 0xaff   :  { %2349 = vmatpush3.msra.mxu1 %v2776_v2  ;;  %2356 = vmatprep.mubr.msk.f32.mxu1 %vm2692_vm0, %v2691_v0 }
 0xb00   :  { %2350 = vmatprep.subr.mxu1 %v2691_v0 }
 0xb01   :  { %2351 = vmatpush3.msra.mxu1 %v2785_v4 }
 0xb02   :  { %2352 = vmatprep.subr.mxu1 %v2691_v0 }
 0xb03   :  { %2353 = vmatpush3.msra.mxu1 %v2792_v6 }
 0xb04   :  { %2354 = vmatprep.subr.mxu1 %v2691_v0 }
 0xb05   :  { %2355 = vmatpush3.msra.mxu1 %v2799_v7 }
 0xb06   :  { %2370 = vmatprep.subr.mxu1 %v2691_v0 }
 0xbbe   :  { %v656_v34 = vpop.f32.mrf.mxu1 }
 0xbbf   :  { %v661_v35 = vrot.slane %v656_v34, 4 }
 0xbc0   :  { %v2336_v36 = vpop.f32.mrf.mxu1 }
 0xbc1   :  { %v663_v37 = vadd.f32 %v661_v35, %v2830_v10 }
 0xbc3   :  { %2526 = vtanh.f32 %v663_v37  ;;  %v2152_v39 = vmul.f32 -1.442695, %v663_v37 }
 0xbc5   :  { %2528 = vpow2.f32 %v2152_v39 }
 0xbd0   :  { %v2527_v38 = vpop.eup %2526 }
 0xbd1   :  { %676 = vrot.lane.b32.xlu0 %v2527_v38, %s2693_s24 }
 0xbd2   :  { %v2529_v40 = vpop.eup %2528 }
 0xbd3   :  { %v667_v41 = vadd.f32 1.0, %v2529_v40 }
 0xbd5   :  { %2530 = vrcp.f32 %v667_v41 }
 0xbe2   :  { %v2531_v42 = vpop.eup %2530 }
 0xbe3   :  { %v674_v46 = vmul.f32 %v2531_v42, %v672_v45 }
 0xc43   :  { %v677_v43 = vpop.permute.xlu0 %676 }
 0xc44   :  { %v679_v44 = vmul.f32 %v2531_v42, %v677_v43 }
 0xc46   :  { %681 = vrot.lane.b32.xlu1 %v679_v44, %s2694_s3 }
 0xcb8   :  { %v682_v47 = vpop.permute.xlu1 %681 }
 0xcb9   :  { %v684_v48 = vadd.f32 %v682_v47, %v674_v46 }
 0xcbb   :  { %2532 = vtanh.f32 %v684_v48 }
 0xcc8   :  { %v2533_v49 = vpop.eup %2532 }
 0xcc9   :  { %687 = vrot.lane.b32.xlu0 %v2533_v49, %s2693_s24 }
 0xd3b   :  { %v688_v50 = vpop.permute.xlu0 %687 }
 0xd3c   :  { %v690_v51 = vmul.f32 %v2531_v42, %v688_v50  ;;  %v2943_v50 = vld [vmem:[#allocation6 + $0x18] sm:$0xff] }
 0xd3e   :  { %v692_v52 = vrot.slane %v690_v51, 4  ;;  %v1019_v53 = vsel %vm1018_vm6, %v1017_v32, %v690_v51  ;;  %v1032_v51 = vld [vmem:[#allocation4 + $0x10] sm:$0xff] }
 0xd40   :  { %693 = vrot.lane.b32.xlu1 %v692_v52, %s2694_s3  ;;  %v2946_v52 = vld [vmem:[#allocation6 + $0x10] sm:$0xff] }
 0xdb2   :  { %v694_v54 = vpop.permute.xlu1 %693 }
 0xdb3   :  { %2346 = vmatmul.mubr.msk.f32.vlgmr.msra.gmra.mxu0 %vm165_vm2, %v694_v54  ;;  %v2950_v54 = vld [vmem:[#allocation6 + $0x8] sm:$0xff] }
 0xdb4   :  { %2360 = vmatpush3.msra.mxu0 %v2776_v2  ;;  %2367 = vmatprep.mubr.msk.f32.mxu0 %vm2692_vm0, %v2691_v0 }
 0xdb5   :  { %2361 = vmatprep.subr.mxu0 %v2691_v0 }
 0xdb6   :  { %2362 = vmatpush3.msra.mxu0 %v2785_v4 }
 0xdb7   :  { %2363 = vmatprep.subr.mxu0 %v2691_v0 }
 0xdb8   :  { %2364 = vmatpush3.msra.mxu0 %v2792_v6 }
 0xdb9   :  { %2365 = vmatprep.subr.mxu0 %v2691_v0 }
 0xdba   :  { %2366 = vmatpush3.msra.mxu0 %v2799_v7  ;;  %v779_v7 = vrot.slane %v684_v48, 7 }
 0xdbb   :  { %2381 = vmatprep.subr.mxu0 %v2691_v0 }
 0xe73   :  { %v763_v55 = vpop.f32.mrf.mxu0 }
 0xe74   :  { %v768_v56 = vrot.slane %v763_v55, 3  ;;  %v1030_v55 = vld [vmem:[#allocation4] sm:$0xff] }
 0xe75   :  { %v2347_v2 = vpop.f32.mrf.mxu0 }
 0xe76   :  { %v770_v57 = vadd.f32 %v768_v56, %v2830_v10  ;;  %v2955_v56 = vld [vmem:[#allocation6] sm:$0xff] }
 0xe78   :  { %2534 = vtanh.f32 %v770_v57  ;;  %v2154_v4 = vmul.f32 -1.442695, %v770_v57 }
 0xe7a   :  { %2536 = vpow2.f32 %v2154_v4 }
 0xe85   :  { %v2535_v58 = vpop.eup %2534 }
 0xe86   :  { %783 = vrot.lane.b32.xlu0 %v2535_v58, %s2693_s24 }
 0xe87   :  { %v2537_v59 = vpop.eup %2536 }
 0xe88   :  { %v774_v60 = vadd.f32 1.0, %v2537_v59 }
 0xe8a   :  { %2538 = vrcp.f32 %v774_v60 }
 0xe97   :  { %v2539_v6 = vpop.eup %2538 }
 0xe98   :  { %v781_v63 = vmul.f32 %v2539_v6, %v779_v7 }
 0xef8   :  { %v784_v61 = vpop.permute.xlu0 %783 }
 0xef9   :  { %v786_v62 = vmul.f32 %v2539_v6, %v784_v61  ;;  %v2159_v61 = vld [vmem:[%s3140_s6] ss:$0 sm:$0xff] }
 0xefb   :  { %788 = vrot.lane.b32.xlu1 %v786_v62, %s2694_s3 }
 0xf6d   :  { %v789_v1 = vpop.permute.xlu1 %788 }
 0xf6e   :  { %v791_v3 = vadd.f32 %v789_v1, %v781_v63 }
 0xf70   :  { %2540 = vtanh.f32 %v791_v3  ;;  %v886_v25 = vrot.slane %v791_v3, 7 }
 0xf7d   :  { %v2541_v5 = vpop.eup %2540 }
 0xf7e   :  { %794 = vrot.lane.b32.xlu0 %v2541_v5, %s2693_s24 }
 0xff0   :  { %v795_v8 = vpop.permute.xlu0 %794 }
 0xff1   :  { %v797_v9 = vmul.f32 %v2539_v6, %v795_v8 }
 0xff3   :  { %v799_v11 = vrot.slane %v797_v9, 5  ;;  %v1021_v12 = vsel %vm1020_vm7, %v1019_v53, %v797_v9  ;;  %v1031_v53 = vld [vmem:[#allocation4 + $0x8] sm:$0xff] }
 0xff5   :  { %800 = vrot.lane.b32.xlu1 %v799_v11, %s2694_s3 }
0x1067   :  { %v801_v13 = vpop.permute.xlu1 %800 }
0x1068   :  { %2357 = vmatmul.mubr.msk.f32.vlgmr.msra.gmra.mxu1 %vm165_vm2, %v801_v13 }
0x1069   :  { %2378 = vmatprep.mubr.msk.f32.mxu1 %vm2692_vm0, %v2691_v0 }
0x1128   :  { %v870_v14 = vpop.f32.mrf.mxu1 }
0x1129   :  { %v875_v15 = vrot.slane %v870_v14, 2 }
0x112a   :  { %v2358_v16 = vpop.f32.mrf.mxu1 }
0x112b   :  { %v877_v17 = vadd.f32 %v875_v15, %v2830_v10 }
0x112d   :  { %2542 = vtanh.f32 %v877_v17  ;;  %v2156_v19 = vmul.f32 -1.442695, %v877_v17 }
0x112f   :  { %2544 = vpow2.f32 %v2156_v19 }
0x113a   :  { %v2543_v18 = vpop.eup %2542 }
0x113b   :  { %890 = vrot.lane.b32.xlu0 %v2543_v18, %s2693_s24 }
0x113c   :  { %v2545_v20 = vpop.eup %2544 }
0x113d   :  { %v881_v21 = vadd.f32 1.0, %v2545_v20 }
0x113f   :  { %2546 = vrcp.f32 %v881_v21 }
0x114c   :  { %v2547_v22 = vpop.eup %2546 }
0x114d   :  { %v888_v26 = vmul.f32 %v2547_v22, %v886_v25 }
0x11ad   :  { %v891_v23 = vpop.permute.xlu0 %890 }
0x11ae   :  { %v893_v24 = vmul.f32 %v2547_v22, %v891_v23 }
0x11b0   :  { %895 = vrot.lane.b32.xlu1 %v893_v24, %s2694_s3 }
0x1222   :  { %v896_v27 = vpop.permute.xlu1 %895 }
0x1223   :  { %v898_v28 = vadd.f32 %v896_v27, %v888_v26 }
0x1225   :  { %2548 = vtanh.f32 %v898_v28  ;;  %v993_v46 = vrot.slane %v898_v28, 7 }
0x1232   :  { %v2549_v29 = vpop.eup %2548 }
0x1233   :  { %901 = vrot.lane.b32.xlu0 %v2549_v29, %s2693_s24 }
0x12a5   :  { %v902_v30 = vpop.permute.xlu0 %901 }
0x12a6   :  { %v904_v31 = vmul.f32 %v2547_v22, %v902_v30 }
0x12a8   :  { %v906_v32 = vrot.slane %v904_v31, 6  ;;  %v2934_v33 = vsel %vm1022_vm8, %v1021_v12, %v904_v31 }
0x12aa   :  { %907 = vrot.lane.b32.xlu1 %v906_v32, %s2694_s3 }
0x131c   :  { %v908_v34 = vpop.permute.xlu1 %907 }
0x131d   :  { %2368 = vmatmul.mubr.msk.f32.vlgmr.msra.gmra.mxu0 %vm165_vm2, %v908_v34 }
0x131e   :  { %2389 = vmatprep.mubr.msk.f32.mxu0 %vm2692_vm0, %v2691_v0  ;;  %2382 = vmatpush3.msra.mxu0 %v2943_v50 }
0x131f   :  { %2383 = vmatprep.subr.mxu0 %v2691_v0 }
0x1320   :  { %2384 = vmatpush3.msra.mxu0 %v2946_v52 }
0x1321   :  { %2385 = vmatprep.subr.mxu0 %v2691_v0 }
0x1322   :  { %2386 = vmatpush3.msra.mxu0 %v2950_v54 }
0x1323   :  { %2387 = vmatprep.subr.mxu0 %v2691_v0 }
0x1324   :  { %2388 = vmatpush3.msra.mxu0 %v2955_v56 }
0x1325   :  { %2390 = vmatmul.mubr.f32.vlgmr.msra.gmra.mxu0 %v2691_v0  ;;  %2403 = vmatprep.subr.mxu0 %v2691_v0 }
0x1326   :  { %2411 = vmatprep.mubr.msk.f32.mxu0 %vm2692_vm0, %v2691_v0  ;;  %2404 = vmatpush3.msra.mxu0 %v2943_v50 }
0x1327   :  { %2405 = vmatprep.subr.mxu0 %v2691_v0 }
0x1328   :  { %2406 = vmatpush3.msra.mxu0 %v2946_v52 }
0x1329   :  { %2407 = vmatprep.subr.mxu0 %v2691_v0 }
0x132a   :  { %2408 = vmatpush3.msra.mxu0 %v2950_v54 }
0x132b   :  { %2409 = vmatprep.subr.mxu0 %v2691_v0 }
0x132c   :  { %2410 = vmatpush3.msra.mxu0 %v2955_v56 }
0x132d   :  { %2425 = vmatprep.subr.mxu0 %v2691_v0 }
0x13dd   :  { %v977_v35 = vpop.f32.mrf.mxu0 }
0x13de   :  { %v982_v36 = vrot.slane %v977_v35, 1 }
0x13df   :  { %v2369_v37 = vpop.f32.mrf.mxu0 }
0x13e0   :  { %v984_v38 = vadd.f32 %v982_v36, %v2830_v10  ;;  %v1033_v10 = vld [vmem:[#allocation4 + $0x18] sm:$0xff] }
0x13e1   :  { %2371 = vmatpush3.msra.mxu1 %v1033_v10 }
0x13e2   :  { %2550 = vtanh.f32 %v984_v38  ;;  %v2158_v40 = vmul.f32 -1.442695, %v984_v38  ;;  %2372 = vmatprep.subr.mxu1 %v2691_v0 }
0x13e3   :  { %2373 = vmatpush3.msra.mxu1 %v1032_v51 }
0x13e4   :  { %2552 = vpow2.f32 %v2158_v40  ;;  %2374 = vmatprep.subr.mxu1 %v2691_v0 }
0x13e5   :  { %2375 = vmatpush3.msra.mxu1 %v1031_v53  ;;  %v1182_v60 = vpop.f32.mrf.mxu0 }
0x13e6   :  { %2376 = vmatprep.subr.mxu1 %v2691_v0 }
0x13e7   :  { %2377 = vmatpush3.msra.mxu1 %v1030_v55  ;;  %v2391_v6 = vpop.f32.mrf.mxu0 }
0x13e8   :  { %2392 = vmatprep.subr.mxu1 %v2691_v0 }
0x13ef   :  { %v2551_v39 = vpop.eup %2550 }
0x13f0   :  { %997 = vrot.lane.b32.xlu0 %v2551_v39, %s2693_s24 }
0x13f1   :  { %v2553_v41 = vpop.eup %2552 }
0x13f2   :  { %v988_v42 = vadd.f32 1.0, %v2553_v41 }
0x13f4   :  { %2554 = vrcp.f32 %v988_v42 }
0x1401   :  { %v2555_v43 = vpop.eup %2554 }
0x1402   :  { %v995_v47 = vmul.f32 %v2555_v43, %v993_v46 }
0x1462   :  { %v998_v44 = vpop.permute.xlu0 %997 }
0x1463   :  { %v1000_v45 = vmul.f32 %v2555_v43, %v998_v44 }
0x1465   :  { %1002 = vrot.lane.b32.xlu1 %v1000_v45, %s2694_s3 }
0x14d7   :  { %v1003_v48 = vpop.permute.xlu1 %1002 }
0x14d8   :  { %v1005_v49 = vadd.f32 %v1003_v48, %v995_v47 }
0x14da   :  { %2556 = vtanh.f32 %v1005_v49 }
0x14e7   :  { %v2557_v2 = vpop.eup %2556 }
0x14e8   :  { %1008 = vrot.lane.b32.xlu0 %v2557_v2, %s2693_s24 }
0x155a   :  { %v1009_v57 = vpop.permute.xlu0 %1008 }
0x155b   :  { %v1011_v58 = vmul.f32 %v2555_v43, %v1009_v57 }
0x155d   :  { %v1025_v4 = vsel %vm1024_vm9, %v2934_v33, %v1011_v58 }
0x155e   :  { %1042 = vrot.lane.b32.xlu1 %v1025_v4, %s2694_s3 }
0x15d0   :  { %v1043_v59 = vpop.permute.xlu1 %1042 }
0x15d1   :  { %2379 = vmatmul.mubr.msk.f32.vlgmr.msra.gmra.mxu1 %vm165_vm2, %v1043_v59 }
0x15d2   :  { %2393 = vmatpush3.msra.mxu1 %v2943_v50  ;;  %2400 = vmatprep.mubr.msk.f32.mxu1 %vm2692_vm0, %v2691_v0 }
0x15d3   :  { %2394 = vmatprep.subr.mxu1 %v2691_v0 }
0x15d4   :  { %2395 = vmatpush3.msra.mxu1 %v2946_v52 }
0x15d5   :  { %2396 = vmatprep.subr.mxu1 %v2691_v0 }
0x15d6   :  { %2397 = vmatpush3.msra.mxu1 %v2950_v54 }
0x15d7   :  { %2398 = vmatprep.subr.mxu1 %v2691_v0 }
0x15d8   :  { %2399 = vmatpush3.msra.mxu1 %v2955_v56 }
0x15d9   :  { %2414 = vmatprep.subr.mxu1 %v2691_v0 }
0x1691   :  { %v1112_v62 = vpop.f32.mrf.mxu1 }
0x1692   :  { %v2992_v7 = vadd.f32 %v2159_v61, %v1112_v62 }
0x1693   :  { %v2380_v63 = vpop.f32.mrf.mxu1 }
0x1694   :  { %v1186_v1 = vadd.f32 %v1182_v60, %v2992_v7 }
0x1696   :  { %2558 = vtanh.f32 %v1186_v1  ;;  %v2161_v5 = vmul.f32 -1.442695, %v1186_v1 }
0x1698   :  { %2560 = vpow2.f32 %v2161_v5 }
0x16a3   :  { %v2559_v3 = vpop.eup %2558 }
0x16a4   :  { %1196 = vrot.lane.b32.xlu0 %v2559_v3, %s2693_s24 }
0x16a5   :  { %v2561_v8 = vpop.eup %2560 }
0x16a6   :  { %v1190_v9 = vadd.f32 1.0, %v2561_v8 }
0x16a8   :  { %2562 = vrcp.f32 %v1190_v9 }
0x16b5   :  { %v2563_v11 = vpop.eup %2562 }
0x16b6   :  { %v1194_v14 = vmul.f32 0.0, %v2563_v11 }
0x1716   :  { %v1197_v12 = vpop.permute.xlu0 %1196 }
0x1717   :  { %v1199_v13 = vmul.f32 %v2563_v11, %v1197_v12 }
0x1719   :  { %1201 = vrot.lane.b32.xlu1 %v1199_v13, %s2694_s3 }
0x178b   :  { %v1202_v15 = vpop.permute.xlu1 %1201 }
0x178c   :  { %v1204_v16 = vadd.f32 %v1202_v15, %v1194_v14 }
0x178e   :  { %2564 = vtanh.f32 %v1204_v16  ;;  %v1298_v32 = vrot.slane %v1204_v16, 7 }
0x179b   :  { %v2565_v17 = vpop.eup %2564 }
0x179c   :  { %1207 = vrot.lane.b32.xlu0 %v2565_v17, %s2693_s24 }
0x180e   :  { %v1208_v18 = vpop.permute.xlu0 %1207 }
0x180f   :  { %v2998_v19 = vmul.f32 %v2563_v11, %v1208_v18 }
0x1811   :  { %1212 = vrot.lane.b32.xlu1 %v2998_v19, %s2694_s3 }
0x1883   :  { %v1213_v20 = vpop.permute.xlu1 %1212 }
0x1884   :  { %2401 = vmatmul.mubr.msk.f32.vlgmr.msra.gmra.mxu1 %vm165_vm2, %v1213_v20 }
0x1885   :  { %2415 = vmatpush3.msra.mxu1 %v2943_v50  ;;  %2422 = vmatprep.mubr.msk.f32.mxu1 %vm2692_vm0, %v2691_v0 }
0x1886   :  { %2416 = vmatprep.subr.mxu1 %v2691_v0 }
0x1887   :  { %2417 = vmatpush3.msra.mxu1 %v2946_v52 }
0x1888   :  { %2418 = vmatprep.subr.mxu1 %v2691_v0 }
0x1889   :  { %2419 = vmatpush3.msra.mxu1 %v2950_v54 }
0x188a   :  { %2420 = vmatprep.subr.mxu1 %v2691_v0 }
0x188b   :  { %2421 = vmatpush3.msra.mxu1 %v2955_v56 }
0x188c   :  { %2436 = vmatprep.subr.mxu1 %v2691_v0 }
0x1944   :  { %v1282_v21 = vpop.f32.mrf.mxu1 }
0x1945   :  { %v1287_v22 = vrot.slane %v1282_v21, 7 }
0x1946   :  { %v2402_v23 = vpop.f32.mrf.mxu1 }
0x1947   :  { %v1289_v24 = vadd.f32 %v1287_v22, %v2992_v7 }
0x1949   :  { %2566 = vtanh.f32 %v1289_v24  ;;  %v2163_v26 = vmul.f32 -1.442695, %v1289_v24 }
0x194b   :  { %2568 = vpow2.f32 %v2163_v26 }
0x1956   :  { %v2567_v25 = vpop.eup %2566 }
0x1957   :  { %1302 = vrot.lane.b32.xlu0 %v2567_v25, %s2693_s24 }
0x1958   :  { %v2569_v27 = vpop.eup %2568 }
0x1959   :  { %v1293_v28 = vadd.f32 1.0, %v2569_v27 }
0x195b   :  { %2570 = vrcp.f32 %v1293_v28 }
0x1968   :  { %v2571_v29 = vpop.eup %2570 }
0x1969   :  { %v1300_v33 = vmul.f32 %v2571_v29, %v1298_v32 }
0x19c9   :  { %v1303_v30 = vpop.permute.xlu0 %1302 }
0x19ca   :  { %v1305_v31 = vmul.f32 %v2571_v29, %v1303_v30 }
0x19cc   :  { %1307 = vrot.lane.b32.xlu1 %v1305_v31, %s2694_s3 }
0x1a3e   :  { %v1308_v34 = vpop.permute.xlu1 %1307 }
0x1a3f   :  { %v1310_v35 = vadd.f32 %v1308_v34, %v1300_v33 }
0x1a41   :  { %2572 = vtanh.f32 %v1310_v35  ;;  %v1405_v53 = vrot.slane %v1310_v35, 7 }
0x1a4e   :  { %v2573_v36 = vpop.eup %2572 }
0x1a4f   :  { %1313 = vrot.lane.b32.xlu0 %v2573_v36, %s2693_s24 }
0x1ac1   :  { %v1314_v37 = vpop.permute.xlu0 %1313 }
0x1ac2   :  { %v1316_v38 = vmul.f32 %v2571_v29, %v1314_v37 }
0x1ac4   :  { %v1318_v39 = vrot.slane %v1316_v38, 1  ;;  %v1959_v60 = vsel %vm1012_vm3, %v2998_v19, %v1316_v38 }
0x1ac6   :  { %1319 = vrot.lane.b32.xlu1 %v1318_v39, %s2694_s3 }
0x1b38   :  { %v1320_v40 = vpop.permute.xlu1 %1319 }
0x1b39   :  { %2412 = vmatmul.mubr.msk.f32.vlgmr.msra.gmra.mxu0 %vm165_vm2, %v1320_v40 }
0x1b3a   :  { %2426 = vmatpush3.msra.mxu0 %v2943_v50  ;;  %2433 = vmatprep.mubr.msk.f32.mxu0 %vm2692_vm0, %v2691_v0 }
0x1b3b   :  { %2427 = vmatprep.subr.mxu0 %v2691_v0 }
0x1b3c   :  { %2428 = vmatpush3.msra.mxu0 %v2946_v52 }
0x1b3d   :  { %2429 = vmatprep.subr.mxu0 %v2691_v0 }
0x1b3e   :  { %2430 = vmatpush3.msra.mxu0 %v2950_v54 }
0x1b3f   :  { %2431 = vmatprep.subr.mxu0 %v2691_v0 }
0x1b40   :  { %2432 = vmatpush3.msra.mxu0 %v2955_v56 }
0x1b41   :  { %2447 = vmatprep.subr.mxu0 %v2691_v0 }
0x1bf9   :  { %v1389_v41 = vpop.f32.mrf.mxu0 }
0x1bfa   :  { %v1394_v42 = vrot.slane %v1389_v41, 6 }
0x1bfb   :  { %v2413_v43 = vpop.f32.mrf.mxu0 }
0x1bfc   :  { %v1396_v44 = vadd.f32 %v1394_v42, %v2992_v7 }
0x1bfe   :  { %2574 = vtanh.f32 %v1396_v44  ;;  %v2165_v46 = vmul.f32 -1.442695, %v1396_v44 }
0x1c00   :  { %2576 = vpow2.f32 %v2165_v46 }
0x1c0b   :  { %v2575_v45 = vpop.eup %2574 }
0x1c0c   :  { %1409 = vrot.lane.b32.xlu0 %v2575_v45, %s2693_s24 }
0x1c0d   :  { %v2577_v47 = vpop.eup %2576 }
0x1c0e   :  { %v1400_v48 = vadd.f32 1.0, %v2577_v47 }
0x1c10   :  { %2578 = vrcp.f32 %v1400_v48 }
0x1c1d   :  { %v2579_v49 = vpop.eup %2578 }
0x1c1e   :  { %v1407_v55 = vmul.f32 %v2579_v49, %v1405_v53 }
0x1c7e   :  { %v1410_v10 = vpop.permute.xlu0 %1409 }
0x1c7f   :  { %v1412_v51 = vmul.f32 %v2579_v49, %v1410_v10 }
0x1c81   :  { %1414 = vrot.lane.b32.xlu1 %v1412_v51, %s2694_s3 }
0x1cf3   :  { %v1415_v2 = vpop.permute.xlu1 %1414 }
0x1cf4   :  { %v1417_v57 = vadd.f32 %v1415_v2, %v1407_v55 }
0x1cf6   :  { %2580 = vtanh.f32 %v1417_v57  ;;  %v1512_v16 = vrot.slane %v1417_v57, 7 }
0x1d03   :  { %v2581_v58 = vpop.eup %2580 }
0x1d04   :  { %1420 = vrot.lane.b32.xlu0 %v2581_v58, %s2693_s24 }
0x1d76   :  { %v1421_v4 = vpop.permute.xlu0 %1420 }
0x1d77   :  { %v1423_v59 = vmul.f32 %v2579_v49, %v1421_v4 }
0x1d79   :  { %v1425_v6 = vrot.slane %v1423_v59, 2  ;;  %v1960_v61 = vsel %vm1014_vm4, %v1959_v60, %v1423_v59 }
0x1d7b   :  { %1426 = vrot.lane.b32.xlu1 %v1425_v6, %s2694_s3 }
0x1ded   :  { %v1427_v62 = vpop.permute.xlu1 %1426 }
0x1dee   :  { %2423 = vmatmul.mubr.msk.f32.vlgmr.msra.gmra.mxu1 %vm165_vm2, %v1427_v62 }
0x1def   :  { %2437 = vmatpush3.msra.mxu1 %v2943_v50  ;;  %2444 = vmatprep.mubr.msk.f32.mxu1 %vm2692_vm0, %v2691_v0 }
0x1df0   :  { %2438 = vmatprep.subr.mxu1 %v2691_v0 }
0x1df1   :  { %2439 = vmatpush3.msra.mxu1 %v2946_v52 }
0x1df2   :  { %2440 = vmatprep.subr.mxu1 %v2691_v0 }
0x1df3   :  { %2441 = vmatpush3.msra.mxu1 %v2950_v54 }
0x1df4   :  { %2442 = vmatprep.subr.mxu1 %v2691_v0 }
0x1df5   :  { %2443 = vmatpush3.msra.mxu1 %v2955_v56 }
0x1df6   :  { %2458 = vmatprep.subr.mxu1 %v2691_v0 }
0x1eae   :  { %v1496_v63 = vpop.f32.mrf.mxu1 }
0x1eaf   :  { %v1501_v1 = vrot.slane %v1496_v63, 5 }
0x1eb0   :  { %v2424_v3 = vpop.f32.mrf.mxu1 }
0x1eb1   :  { %v1503_v5 = vadd.f32 %v1501_v1, %v2992_v7 }
0x1eb3   :  { %2582 = vtanh.f32 %v1503_v5  ;;  %v2167_v9 = vmul.f32 -1.442695, %v1503_v5 }
0x1eb5   :  { %2584 = vpow2.f32 %v2167_v9 }
0x1ec0   :  { %v2583_v8 = vpop.eup %2582 }
0x1ec1   :  { %1516 = vrot.lane.b32.xlu0 %v2583_v8, %s2693_s24 }
0x1ec2   :  { %v2585_v11 = vpop.eup %2584 }
0x1ec3   :  { %v1507_v12 = vadd.f32 1.0, %v2585_v11 }
0x1ec5   :  { %2586 = vrcp.f32 %v1507_v12 }
0x1ed2   :  { %v2587_v13 = vpop.eup %2586 }
0x1ed3   :  { %v1514_v17 = vmul.f32 %v2587_v13, %v1512_v16 }
0x1f33   :  { %v1517_v14 = vpop.permute.xlu0 %1516 }
0x1f34   :  { %v1519_v15 = vmul.f32 %v2587_v13, %v1517_v14 }
0x1f36   :  { %1521 = vrot.lane.b32.xlu1 %v1519_v15, %s2694_s3 }
0x1fa8   :  { %v1522_v18 = vpop.permute.xlu1 %1521 }
0x1fa9   :  { %v1524_v19 = vadd.f32 %v1522_v18, %v1514_v17 }
0x1fab   :  { %2588 = vtanh.f32 %v1524_v19  ;;  %v1619_v37 = vrot.slane %v1524_v19, 7 }
0x1fb8   :  { %v2589_v20 = vpop.eup %2588 }
0x1fb9   :  { %1527 = vrot.lane.b32.xlu0 %v2589_v20, %s2693_s24 }
0x202b   :  { %v1528_v21 = vpop.permute.xlu0 %1527 }
0x202c   :  { %v1530_v22 = vmul.f32 %v2587_v13, %v1528_v21 }
0x202e   :  { %v1532_v23 = vrot.slane %v1530_v22, 3  ;;  %v1961_v24 = vsel %vm1016_vm5, %v1960_v61, %v1530_v22 }
0x2030   :  { %1533 = vrot.lane.b32.xlu1 %v1532_v23, %s2694_s3 }
0x20a2   :  { %v1534_v25 = vpop.permute.xlu1 %1533 }
0x20a3   :  { %2434 = vmatmul.mubr.msk.f32.vlgmr.msra.gmra.mxu0 %vm165_vm2, %v1534_v25 }
0x20a4   :  { %2448 = vmatpush3.msra.mxu0 %v2943_v50  ;;  %2455 = vmatprep.mubr.msk.f32.mxu0 %vm2692_vm0, %v2691_v0 }
0x20a5   :  { %2449 = vmatprep.subr.mxu0 %v2691_v0 }
0x20a6   :  { %2450 = vmatpush3.msra.mxu0 %v2946_v52 }
0x20a7   :  { %2451 = vmatprep.subr.mxu0 %v2691_v0 }
0x20a8   :  { %2452 = vmatpush3.msra.mxu0 %v2950_v54 }
0x20a9   :  { %2453 = vmatprep.subr.mxu0 %v2691_v0 }
0x20aa   :  { %2454 = vmatpush3.msra.mxu0 %v2955_v56 }
0x20ab   :  { %2469 = vmatprep.subr.mxu0 %v2691_v0 }
0x2163   :  { %v1603_v26 = vpop.f32.mrf.mxu0 }
0x2164   :  { %v1608_v27 = vrot.slane %v1603_v26, 4 }
0x2165   :  { %v2435_v28 = vpop.f32.mrf.mxu0 }
0x2166   :  { %v1610_v29 = vadd.f32 %v1608_v27, %v2992_v7 }
0x2168   :  { %2590 = vtanh.f32 %v1610_v29  ;;  %v2169_v31 = vmul.f32 -1.442695, %v1610_v29 }
0x216a   :  { %2592 = vpow2.f32 %v2169_v31 }
0x2175   :  { %v2591_v30 = vpop.eup %2590 }
0x2176   :  { %1623 = vrot.lane.b32.xlu0 %v2591_v30, %s2693_s24 }
0x2177   :  { %v2593_v32 = vpop.eup %2592 }
0x2178   :  { %v1614_v33 = vadd.f32 1.0, %v2593_v32 }
0x217a   :  { %2594 = vrcp.f32 %v1614_v33 }
0x2187   :  { %v2595_v34 = vpop.eup %2594 }
0x2188   :  { %v1621_v38 = vmul.f32 %v2595_v34, %v1619_v37 }
0x21e8   :  { %v1624_v35 = vpop.permute.xlu0 %1623 }
0x21e9   :  { %v1626_v36 = vmul.f32 %v2595_v34, %v1624_v35 }
0x21eb   :  { %1628 = vrot.lane.b32.xlu1 %v1626_v36, %s2694_s3 }
0x225d   :  { %v1629_v39 = vpop.permute.xlu1 %1628 }
0x225e   :  { %v1631_v40 = vadd.f32 %v1629_v39, %v1621_v38 }
0x2260   :  { %2596 = vtanh.f32 %v1631_v40 }
0x226d   :  { %v2597_v41 = vpop.eup %2596 }
0x226e   :  { %1634 = vrot.lane.b32.xlu0 %v2597_v41, %s2693_s24 }
0x22e0   :  { %v1635_v42 = vpop.permute.xlu0 %1634 }
0x22e1   :  { %v1637_v43 = vmul.f32 %v2595_v34, %v1635_v42  ;;  %v1968_v42 = vld [vmem:[%s3141_s7 + $0x10] sm:$0xff] }
0x22e3   :  { %v1639_v44 = vrot.slane %v1637_v43, 4  ;;  %v1962_v45 = vsel %vm1018_vm6, %v1961_v24, %v1637_v43  ;;  %v1967_v43 = vld [vmem:[%s3141_s7 + $0x8] sm:$0xff] }
0x22e5   :  { %1640 = vrot.lane.b32.xlu1 %v1639_v44, %s2694_s3  ;;  %v1966_v44 = vld [vmem:[%s3141_s7] sm:$0xff] }
0x2357   :  { %v1641_v46 = vpop.permute.xlu1 %1640 }
0x2358   :  { %2445 = vmatmul.mubr.msk.f32.vlgmr.msra.gmra.mxu1 %vm165_vm2, %v1641_v46  ;;  %v2052_v46 = vld [vmem:[%s3143_s9] sm:$0xff] }
0x2359   :  { %2459 = vmatpush3.msra.mxu1 %v2943_v50  ;;  %2466 = vmatprep.mubr.msk.f32.mxu1 %vm2692_vm0, %v2691_v0 }
0x235a   :  { %2460 = vmatprep.subr.mxu1 %v2691_v0 }
0x235b   :  { %2461 = vmatpush3.msra.mxu1 %v2946_v52 }
0x235c   :  { %2462 = vmatprep.subr.mxu1 %v2691_v0 }
0x235d   :  { %2463 = vmatpush3.msra.mxu1 %v2950_v54 }
0x235e   :  { %2464 = vmatprep.subr.mxu1 %v2691_v0 }
0x235f   :  { %2465 = vmatpush3.msra.mxu1 %v2955_v56  ;;  %v1726_v56 = vrot.slane %v1631_v40, 7 }
0x2360   :  { %2480 = vmatprep.subr.mxu1 %v2691_v0 }
0x2418   :  { %v1710_v47 = vpop.f32.mrf.mxu1 }
0x2419   :  { %v1715_v48 = vrot.slane %v1710_v47, 3 }
0x241a   :  { %v2446_v50 = vpop.f32.mrf.mxu1 }
0x241b   :  { %v1717_v49 = vadd.f32 %v1715_v48, %v2992_v7 }
0x241d   :  { %2598 = vtanh.f32 %v1717_v49  ;;  %v2171_v52 = vmul.f32 -1.442695, %v1717_v49 }
0x241f   :  { %2600 = vpow2.f32 %v2171_v52 }
0x242a   :  { %v2599_v10 = vpop.eup %2598 }
0x242b   :  { %1730 = vrot.lane.b32.xlu0 %v2599_v10, %s2693_s24 }
0x242c   :  { %v2601_v51 = vpop.eup %2600 }
0x242d   :  { %v1721_v53 = vadd.f32 1.0, %v2601_v51 }
0x242f   :  { %2602 = vrcp.f32 %v1721_v53  ;;  %v2178_v53 = vld [vmem:[%s3144_s10] ss:$0 sm:$0xff] }
0x243c   :  { %v2603_v54 = vpop.eup %2602 }
0x243d   :  { %v1728_v57 = vmul.f32 %v2603_v54, %v1726_v56 }
0x249d   :  { %v1731_v55 = vpop.permute.xlu0 %1730 }
0x249e   :  { %v1733_v2 = vmul.f32 %v2603_v54, %v1731_v55 }
0x24a0   :  { %1735 = vrot.lane.b32.xlu1 %v1733_v2, %s2694_s3 }
0x2512   :  { %v1736_v58 = vpop.permute.xlu1 %1735 }
0x2513   :  { %v1738_v4 = vadd.f32 %v1736_v58, %v1728_v57 }
0x2515   :  { %2604 = vtanh.f32 %v1738_v4  ;;  %v1833_v17 = vrot.slane %v1738_v4, 7 }
0x2522   :  { %v2605_v59 = vpop.eup %2604 }
0x2523   :  { %1741 = vrot.lane.b32.xlu0 %v2605_v59, %s2693_s24 }
0x2595   :  { %v1742_v60 = vpop.permute.xlu0 %1741 }
0x2596   :  { %v1744_v6 = vmul.f32 %v2603_v54, %v1742_v60 }
0x2598   :  { %v1746_v61 = vrot.slane %v1744_v6, 5  ;;  %v1963_v62 = vsel %vm1020_vm7, %v1962_v45, %v1744_v6 }
0x259a   :  { %1747 = vrot.lane.b32.xlu1 %v1746_v61, %s2694_s3 }
0x260c   :  { %v1748_v63 = vpop.permute.xlu1 %1747 }
0x260d   :  { %2456 = vmatmul.mubr.msk.f32.vlgmr.msra.gmra.mxu0 %vm165_vm2, %v1748_v63 }
0x260e   :  { %2477 = vmatprep.mubr.msk.f32.mxu0 %vm2692_vm0, %v2691_v0 }
0x26cd   :  { %v1817_v1 = vpop.f32.mrf.mxu0 }
0x26ce   :  { %v1822_v3 = vrot.slane %v1817_v1, 2 }
0x26cf   :  { %v2457_v5 = vpop.f32.mrf.mxu0 }
0x26d0   :  { %v1824_v8 = vadd.f32 %v1822_v3, %v2992_v7 }
0x26d2   :  { %2606 = vtanh.f32 %v1824_v8  ;;  %v2173_v11 = vmul.f32 -1.442695, %v1824_v8 }
0x26d4   :  { %2608 = vpow2.f32 %v2173_v11 }
0x26df   :  { %v2607_v9 = vpop.eup %2606 }
0x26e0   :  { %1837 = vrot.lane.b32.xlu0 %v2607_v9, %s2693_s24 }
0x26e1   :  { %v2609_v12 = vpop.eup %2608 }
0x26e2   :  { %v1828_v13 = vadd.f32 1.0, %v2609_v12 }
0x26e4   :  { %2610 = vrcp.f32 %v1828_v13 }
0x26f1   :  { %v2611_v14 = vpop.eup %2610 }
0x26f2   :  { %v1835_v18 = vmul.f32 %v2611_v14, %v1833_v17 }
0x2752   :  { %v1838_v15 = vpop.permute.xlu0 %1837 }
0x2753   :  { %v1840_v16 = vmul.f32 %v2611_v14, %v1838_v15 }
0x2755   :  { %1842 = vrot.lane.b32.xlu1 %v1840_v16, %s2694_s3 }
0x27c7   :  { %v1843_v19 = vpop.permute.xlu1 %1842 }
0x27c8   :  { %v1845_v20 = vadd.f32 %v1843_v19, %v1835_v18 }
0x27ca   :  { %2612 = vtanh.f32 %v1845_v20  ;;  %v1940_v38 = vrot.slane %v1845_v20, 7 }
0x27d7   :  { %v2613_v21 = vpop.eup %2612 }
0x27d8   :  { %1848 = vrot.lane.b32.xlu0 %v2613_v21, %s2693_s24 }
0x284a   :  { %v1849_v22 = vpop.permute.xlu0 %1848 }
0x284b   :  { %v1851_v23 = vmul.f32 %v2611_v14, %v1849_v22 }
0x284d   :  { %v1853_v24 = vrot.slane %v1851_v23, 6  ;;  %v1964_v25 = vsel %vm1022_vm8, %v1963_v62, %v1851_v23 }
0x284f   :  { %1854 = vrot.lane.b32.xlu1 %v1853_v24, %s2694_s3 }
0x28c1   :  { %v1855_v26 = vpop.permute.xlu1 %1854 }
0x28c2   :  { %2467 = vmatmul.mubr.msk.f32.vlgmr.msra.gmra.mxu1 %vm165_vm2, %v1855_v26 }
0x28c3   :  { %2482 = vmatprep.mubr.msk.f32.mxu1 %vm2692_vm0, %v2691_v0  ;;  %2481 = vmatpush3.msra.mxu1 %v2052_v46 }
0x2982   :  { %v1924_v27 = vpop.f32.mrf.mxu1 }
0x2983   :  { %v1929_v28 = vrot.slane %v1924_v27, 1 }
0x2984   :  { %v2468_v29 = vpop.f32.mrf.mxu1 }
0x2985   :  { %v1931_v30 = vadd.f32 %v1929_v28, %v2992_v7  ;;  %v1969_v7 = vld [vmem:[%s3141_s7 + $0x18] sm:$0xff] }
0x2986   :  { %2470 = vmatpush3.msra.mxu0 %v1969_v7 }
0x2987   :  { %2614 = vtanh.f32 %v1931_v30  ;;  %v2175_v32 = vmul.f32 -1.442695, %v1931_v30  ;;  %2471 = vmatprep.subr.mxu0 %v2691_v0 }
0x2988   :  { %2472 = vmatpush3.msra.mxu0 %v1968_v42 }
0x2989   :  { %2616 = vpow2.f32 %v2175_v32  ;;  %2473 = vmatprep.subr.mxu0 %v2691_v0 }
0x298a   :  { %2474 = vmatpush3.msra.mxu0 %v1967_v43 }
0x298b   :  { %2475 = vmatprep.subr.mxu0 %v2691_v0  ;;  %v2176_v0 = vld [vmem:[%s3142_s8] ss:$0 sm:$0xff] }
0x298c   :  { %2476 = vmatpush3.msra.mxu0 %v1966_v44 }
0x2994   :  { %v2615_v31 = vpop.eup %2614 }
0x2995   :  { %1944 = vrot.lane.b32.xlu0 %v2615_v31, %s2693_s24 }
0x2996   :  { %v2617_v33 = vpop.eup %2616 }
0x2997   :  { %v1935_v34 = vadd.f32 1.0, %v2617_v33 }
0x2999   :  { %2618 = vrcp.f32 %v1935_v34 }
0x29a6   :  { %v2619_v35 = vpop.eup %2618 }
0x29a7   :  { %v1942_v39 = vmul.f32 %v2619_v35, %v1940_v38 }
0x2a07   :  { %v1945_v36 = vpop.permute.xlu0 %1944 }
0x2a08   :  { %v1947_v37 = vmul.f32 %v2619_v35, %v1945_v36 }
0x2a0a   :  { %1949 = vrot.lane.b32.xlu1 %v1947_v37, %s2694_s3 }
0x2a7c   :  { %v1950_v40 = vpop.permute.xlu1 %1949 }
0x2a7d   :  { %v1952_v41 = vadd.f32 %v1950_v40, %v1942_v39 }
0x2a7f   :  { %2620 = vtanh.f32 %v1952_v41 }
0x2a8c   :  { %v2621_v45 = vpop.eup %2620 }
0x2a8d   :  { %1955 = vrot.lane.b32.xlu0 %v2621_v45, %s2693_s24 }
0x2aff   :  { %v1956_v47 = vpop.permute.xlu0 %1955 }
0x2b00   :  { %v1958_v48 = vmul.f32 %v2619_v35, %v1956_v47 }
0x2b02   :  { %v1965_v50 = vsel %vm1024_vm9, %v1964_v25, %v1958_v48 }
0x2b03   :  { %1978 = vrot.lane.b32.xlu1 %v1965_v50, %s2694_s3 }
0x2b75   :  { %v1979_v49 = vpop.permute.xlu1 %1978 }
0x2b76   :  { %2478 = vmatmul.mubr.msk.f32.vlgmr.msra.gmra.mxu0 %vm165_vm2, %v1979_v49 }
0x2c36   :  { %v2048_v10 = vpop.f32.mrf.mxu0 }
0x2c37   :  { %v2049_v52 = vadd.f32 %v2176_v0, %v2048_v10 }
0x2c38   :  { %v2479_v51 = vpop.f32.mrf.mxu0 }
0x2c39   :  { %2483 = vmatmul.mubr.msk.f32.vlgmr.msra.gmra.mxu1 %vm2060_vm10, %v2049_v52 }
0x2cf9   :  { %v2130_v54 = vpop.f32.mrf.mxu1 }
0x2cfa   :  { %v2131_v55 = vadd.f32 %v2178_v53, %v2130_v54 }
0x2cfb   :  { %v2484_v2 = vpop.f32.mrf.mxu1 }
0x2cfc   :  { %2135 = vst.msk [vmem:[%s3145_s11] sm:$0xff] %vm2134_vm11, %v2131_v55 }
0x2cfd   :  { %2140 = vsyncpa [#allocation3], 1 }
0x2cfe   :  { %2141 = vsyncpa [#allocation5], 1 }

</bundles_post_ra>
